<compile_context>
chip_gen: v6e
topology: v6e:2x2x1
jax: 0.10.0
libtpu: 0.0.40
codegen_flags: <defaults>
</compile_context>

<pallas_src>
import functools

import jax
import jax.numpy as jnp
from jax.experimental import pallas as pl
from jax.experimental.pallas import tpu as pltpu

EPS = 1e-5


# ----------------------------------------------------------------------------
# In-kernel helpers
# ----------------------------------------------------------------------------
def _stride_rows(v, n_samples, t_in, stride):
    """(n_samples*t_in, L) -> (n_samples*t_out, L): keep every `stride`-th frame
    of each sample.  Exact strided slice; replaces the old 0/1 selection matmul."""
    if stride == 1:
        return v
    t_out = (t_in - 1) // stride + 1
    lanes = v.shape[-1]
    if t_in % stride == 0:
        return v.reshape(-1, stride, lanes)[:, 0, :]
    v3 = v.reshape(n_samples, t_in, lanes)
    pad_rows = t_out * stride - t_in
    v3 = jnp.concatenate(
        [v3, jnp.zeros((n_samples, pad_rows, lanes), v.dtype)], axis=1)
    return v3.reshape(n_samples, t_out, stride, lanes)[:, :, 0, :].reshape(
        n_samples * t_out, lanes)


# ----------------------------------------------------------------------------
# Fused kernel: one grid step processes B samples (rows = B*T frames,
# lane-dense C*V columns) through all STGC blocks.
# ----------------------------------------------------------------------------
def _fused_stgc_kernel(*refs, metas, Kt, B):
    x_ref, out_ref = refs[0], refs[-1]
    pre_s_ref, pre_b_ref = refs[1], refs[2]
    params = refs[3:-1]
    pad = (Kt - 1) // 2

    mask_cache = {}

    def boundary_mask(rows, t_len, shift):
        """Per-sample temporal zero-padding mask, periodic in the batched rows."""
        key = (rows, t_len, shift)
        if key not in mask_cache:
            t_local = jax.lax.broadcasted_iota(
                jnp.int32, (rows // t_len, t_len, 1), 1).reshape(rows, 1)
            mask_cache[key] = (t_local + shift >= 0) & (t_local + shift < t_len)
        return mask_cache[key]

    # Leading BatchNorm1d (eval mode) as a per-lane affine.
    x = x_ref[...] * pre_s_ref[...] + pre_b_ref[...]

    idx = 0
    for meta in metas:
        t_in, stride = meta['T_in'], meta['stride']
        identity = meta['identity']
        cout_v = meta['CoutV']
        rows = B * t_in

        w1 = params[idx][...]          # (CinV, CoutV [+CoutV residual]) bf16
        b1 = params[idx + 1][...]      # (1, CoutV) f32
        w2 = params[idx + 2][...]      # (CoutV, Kt*CoutV) bf16 (all taps, wide)
        b2 = params[idx + 3][...]      # (1, CoutV) f32
        idx += 4
        if not identity:
            br = params[idx][...]      # (1, CoutV) f32
            idx += 1

        xb = x.astype(jnp.bfloat16)

        # --- S_GC 1x1 conv + A*M graph contraction + BN1 (+ residual 1x1+BN
        #     lane-fused into the same matmul when present) -------------------
        z = jnp.dot(xb, w1, preferred_element_type=jnp.float32)
        h = jnp.maximum(z[:, :cout_v] + b1, 0.0)

        # --- temporal (Kt,1) conv + BN2: one wide matmul produces all taps;
        #     off-centre taps realigned with f32 sublane rolls + per-sample
        #     zero-padding masks applied to the f32 tap outputs ---------------
        hb = h.astype(jnp.bfloat16)                      # single hoisted cast
        wide = jnp.dot(hb, w2, preferred_element_type=jnp.float32)
        acc = wide[:, pad * cout_v:(pad + 1) * cout_v]   # centre tap, no shift
        for kt in range(Kt):
            if kt == pad:
                continue
            shift = kt - pad                             # need tap[t + shift]
            tap = wide[:, kt * cout_v:(kt + 1) * cout_v]
            tap = pltpu.roll(tap, (-shift) % rows, axis=0)
            acc = acc + jnp.where(boundary_mask(rows, t_in, shift), tap, 0.0)
        acc = acc + b2

        # --- temporal stride: exact strided row slice ------------------------
        acc = _stride_rows(acc, B, t_in, stride)
        g = jnp.maximum(acc, 0.0)

        # --- residual ---------------------------------------------------------
        if identity:
            r = _stride_rows(x, B, t_in, stride)         # stride==1 in practice
        else:
            r = _stride_rows(z[:, cout_v:], B, t_in, stride) + br

        x = g + r

    out_ref[...] = x.astype(out_ref.dtype)


# ----------------------------------------------------------------------------
# Host-side weight folding (all in f32 highest precision, cast to bf16 at end).
# ----------------------------------------------------------------------------
def _lane_repeat(v, V):
    """Per-channel vector -> per-(channel, vertex) lane vector, index o*V + w."""
    return jnp.repeat(v.reshape(-1), V)


def fold_block_params(p, A, V, Cin, Cout, K, Kt):
    """Fold S_GC 1x1 conv + A*M graph contraction + eval-mode BNs into dense
    matmul weights (lane index = channel*V + vertex)."""
    hp = jax.lax.Precision.HIGHEST
    AM = A * p['M']                                            # (K, V, V)
    Wsgc = p['Wsgc'].reshape(K, Cout, Cin)                     # [k, o, c]
    bsgc = p['bsgc'].reshape(K, Cout)                          # [k, o]

    # S_GC + graph:  Z[t, o*V+w] = sum_{c,v} X[t, c*V+v] * W1[c*V+v, o*V+w]
    W1 = jnp.einsum('koc,kvw->cvow', Wsgc, AM,
                    precision=hp).reshape(Cin * V, Cout * V)
    b1 = jnp.einsum('ko,kvw->ow', bsgc, AM, precision=hp).reshape(1, Cout * V)
    s1 = _lane_repeat(p['bn1s'], V)                            # BN1 fold
    W1 = W1 * s1[None, :]
    b1 = b1 * s1[None, :] + _lane_repeat(p['bn1b'], V)[None, :]

    # Temporal taps (channel mix per vertex) + BN2, stacked wide along output
    # lanes so the whole (Kt,1) conv is a single MXU matmul in the kernel.
    # TODO(synk): Kronecker Wt (x) I_V is 15/16 zeros -- restructure at scale.
    eyeV = jnp.eye(V, dtype=jnp.float32)
    s2 = _lane_repeat(p['bn2s'], V)
    W2 = jnp.einsum('koc,vw->kcvow', p['Wt'], eyeV,
                    precision=hp).reshape(Kt, Cout * V, Cout * V) * s2[None, None, :]
    W2_wide = jnp.transpose(W2, (1, 0, 2)).reshape(Cout * V, Kt * Cout * V)
    b2 = (_lane_repeat(p['bt'], V) * s2
          + _lane_repeat(p['bn2b'], V)).reshape(1, Cout * V)

    if p['identity_res']:
        Wr, br = None, None
    else:
        sr = _lane_repeat(p['bnrs'], V)
        Wr = jnp.einsum('oc,vw->cvow', p['Wr'], eyeV,
                        precision=hp).reshape(Cin * V, Cout * V) * sr[None, :]
        br = (_lane_repeat(p['br'], V) * sr
              + _lane_repeat(p['bnrb'], V)).reshape(1, Cout * V)

    return W1, b1, W2_wide, b2, Wr, br


def feature_extractor_forward(x, A, pre_scale_lane, pre_shift_lane, blocks, *,
                              K, Kt, samples_per_step=None,
                              out_dtype=jnp.float32):
    N, C0, T, V = x.shape
    if samples_per_step is None:
        # Batch all samples into one grid step: at these sizes the kernel is
        # overhead-bound and MXU row fill is the biggest lever.  On multi-
        # TensorCore chips (v7x) pass a smaller value so the grid keeps >= 2
        # steps and dimension_semantics=("parallel",) splits across cores.
        samples_per_step = N
    B = samples_per_step
    assert N % B == 0, (N, B)

    args, metas = [], []
    T_in, Cin = T, C0
    for p in blocks:
        Cout = p['Wsgc'].shape[0] // K
        stride = p['stride']
        T_out = (T_in - 1) // stride + 1
        W1, b1, W2w, b2, Wr, br = fold_block_params(p, A, V, Cin, Cout, K, Kt)
        w1 = W1 if Wr is None else jnp.concatenate([W1, Wr], axis=1)
        blk_args = [w1.astype(jnp.bfloat16), b1, W2w.astype(jnp.bfloat16), b2]
        if Wr is not None:
            blk_args.append(br)
        args += blk_args
        metas.append(dict(T_in=T_in, stride=stride, identity=(Wr is None),
                          CoutV=Cout * V))
        T_in, Cin = T_out, Cout
    T_fin, C_fin = T_in, Cin

    # Lane-dense relayout: (N, C, T, V) -> rows (n, t), lanes (c, v).
    x_dense = jnp.transpose(x, (0, 2, 1, 3)).reshape(N * T, C0 * V)
    pre_s = pre_scale_lane.reshape(1, C0 * V).astype(jnp.float32)
    pre_b = pre_shift_lane.reshape(1, C0 * V).astype(jnp.float32)
    consts = [pre_s, pre_b] + args

    def const_spec(a):
        # TODO(synk): single-buffer these constant blocks (pl.Buffered(1)) or
        # stage them once via pl.ANY when scaling -- negligible at demo sizes.
        return pl.BlockSpec(a.shape, lambda n: (0,) * a.ndim)

    out_dense = pl.pallas_call(
        functools.partial(_fused_stgc_kernel, metas=metas, Kt=Kt, B=B),
        out_shape=jax.ShapeDtypeStruct((N * T_fin, C_fin * V), out_dtype),
        grid=(N // B,),
        in_specs=[pl.BlockSpec((B * T, C0 * V), lambda n: (n, 0))]
                 + [const_spec(a) for a in consts],
        out_specs=pl.BlockSpec((B * T_fin, C_fin * V), lambda n: (n, 0)),
        compiler_params=pltpu.CompilerParams(dimension_semantics=("parallel",)),
    )(x_dense, *consts)

    return jnp.transpose(out_dense.reshape(N, T_fin, C_fin, V), (0, 2, 1, 3))


# ----------------------------------------------------------------------------
# Deterministic parameter construction (shapes from the PyTorch __init__).
# ----------------------------------------------------------------------------
def _bn_fold(gamma, beta, mean, var):
    scale = gamma / jnp.sqrt(var + EPS)
    return scale, beta - mean * scale


def _bn_params(key, c):
    k = jax.random.split(key, 4)
    gamma = 1.0 + 0.1 * jax.random.normal(k[0], (c,), jnp.float32)
    beta = 0.1 * jax.random.normal(k[1], (c,), jnp.float32)
    mean = 0.1 * jax.random.normal(k[2], (c,), jnp.float32)
    var = jax.random.uniform(k[3], (c,), jnp.float32, 0.5, 1.5)
    return gamma, beta, mean, var


def init_block_params(key, Cin, Cout, K, Kt, V, stride):
    ks = jax.random.split(key, 8)
    p = {'K': K, 'Kt': Kt, 'stride': stride}
    p['Wsgc'] = 0.2 * jax.random.normal(ks[0], (K * Cout, Cin), jnp.float32)
    p['bsgc'] = 0.1 * jax.random.normal(ks[1], (K * Cout, 1, 1), jnp.float32)
    p['M'] = jnp.ones((K, V, V), jnp.float32)          # nn.Parameter(torch.ones(A_size))
    s1, b1 = _bn_fold(*_bn_params(ks[2], Cout))
    p['bn1s'], p['bn1b'] = s1.reshape(Cout, 1, 1), b1.reshape(Cout, 1, 1)
    p['Wt'] = 0.2 * jax.random.normal(ks[3], (Kt, Cout, Cout), jnp.float32)
    p['bt'] = 0.1 * jax.random.normal(ks[4], (Cout, 1, 1), jnp.float32)
    s2, b2 = _bn_fold(*_bn_params(ks[5], Cout))
    p['bn2s'], p['bn2b'] = s2.reshape(Cout, 1, 1), b2.reshape(Cout, 1, 1)
    if Cin == Cout and stride == 1:
        p['identity_res'] = True
        p['Wr'] = jnp.eye(Cout, dtype=jnp.float32)
        p['br'] = jnp.zeros((Cout, 1, 1), jnp.float32)
        p['bnrs'] = jnp.ones((Cout, 1, 1), jnp.float32)
        p['bnrb'] = jnp.zeros((Cout, 1, 1), jnp.float32)
    else:
        p['identity_res'] = False
        p['Wr'] = 0.2 * jax.random.normal(ks[6], (Cout, Cin), jnp.float32)
        p['br'] = 0.1 * jax.random.normal(ks[7], (Cout, 1, 1), jnp.float32)
        sr, shr = _bn_fold(*_bn_params(jax.random.fold_in(key, 99), Cout))
        p['bnrs'], p['bnrb'] = sr.reshape(Cout, 1, 1), shr.reshape(Cout, 1, 1)
    return p


# ----------------------------------------------------------------------------
# Pure-JAX f32 reference (mirrors the PyTorch forward, eval mode).
# ----------------------------------------------------------------------------
def ref_stgc_block(x, A, p):
    N, Cin, T, V = x.shape
    K, Kt, s = p['K'], p['Kt'], p['stride']
    Cout = p['Wsgc'].shape[0] // K
    AM = A * p['M']
    y = jnp.einsum('oc,nctv->notv', p['Wsgc'], x,
                   precision='highest') + p['bsgc'].reshape(1, -1, 1, 1)
    y = y.reshape(N, K, Cout, T, V)
    z = jnp.einsum('nkctv,kvw->nctw', y, AM, precision='highest')
    h = jnp.maximum(z * p['bn1s'].reshape(1, -1, 1, 1) + p['bn1b'].reshape(1, -1, 1, 1), 0.0)
    wk = jnp.transpose(p['Wt'], (1, 2, 0))[:, :, :, None]          # OIHW, H=Kt, W=1
    pad = (Kt - 1) // 2
    g = jax.lax.conv_general_dilated(h, wk, window_strides=(s, 1),
                                     padding=((pad, pad), (0, 0)),
                                     dimension_numbers=('NCHW', 'OIHW', 'NCHW'),
                                     precision=jax.lax.Precision.HIGHEST)
    g = g + p['bt'].reshape(1, -1, 1, 1)
    g = jnp.maximum(g * p['bn2s'].reshape(1, -1, 1, 1) + p['bn2b'].reshape(1, -1, 1, 1), 0.0)
    if p['identity_res']:
        r = x
    else:
        xr = x[:, :, ::s, :]
        r = jnp.einsum('oc,nctv->notv', p['Wr'], xr,
                       precision='highest') + p['br'].reshape(1, -1, 1, 1)
        r = r * p['bnrs'].reshape(1, -1, 1, 1) + p['bnrb'].reshape(1, -1, 1, 1)
    return g + r


def ref_forward(x, A, bn1d, blocks):
    N, C, T, V = x.shape
    g, b, m, v = bn1d
    xp = jnp.transpose(x, (0, 3, 1, 2)).reshape(N, V * C, T)
    xp = (xp - m[None, :, None]) / jnp.sqrt(v[None, :, None] + EPS) \
        * g[None, :, None] + b[None, :, None]
    x = jnp.transpose(xp.reshape(N, V, C, T), (0, 2, 3, 1))
    for p in blocks:
        x = ref_stgc_block(x, A, p)
    return x


# ----------------------------------------------------------------------------
if __name__ == "__main__":
    key = jax.random.PRNGKey(0)
    N, T, V = 2, 32, 16
    K, Kt = 3, 3                                   # s_kernel_size, t_kernel_size
    config = [(4, 8, 1), (8, 8, 1), (8, 16, 2)]    # (in_ch, out_ch, stride) per block
    C0 = config[0][0]

    kx, ka, kbn, k1, k2, k3 = jax.random.split(key, 6)
    x = jax.random.normal(kx, (N, C0, T, V), jnp.float32)
    A = jax.random.uniform(ka, (K, V, V), jnp.float32) / V

    # BatchNorm1d(C0 * V): running-stat fold, relaid to lane index c*V + v.
    bn1d = _bn_params(kbn, C0 * V)
    s_flat, sh_flat = _bn_fold(*bn1d)                           # index v*C + c
    pre_scale_lane = s_flat.reshape(V, C0).T.reshape(C0 * V)    # index c*V + v
    pre_shift_lane = sh_flat.reshape(V, C0).T.reshape(C0 * V)

    blocks = [
        init_block_params(k1, config[0][0], config[0][1], K, Kt, V, config[0][2]),
        init_block_params(k2, config[1][0], config[1][1], K, Kt, V, config[1][2]),
        init_block_params(k3, config[2][0], config[2][1], K, Kt, V, config[2][2]),
    ]

    out = jax.block_until_ready(
        feature_extractor_forward(x, A, pre_scale_lane, pre_shift_lane, blocks,
                                  K=K, Kt=Kt))
    ref = jax.block_until_ready(ref_forward(x, A, bn1d, blocks))

    assert out.shape == ref.shape, (out.shape, ref.shape)
    # bf16 MXU operands / bf16-folded weights vs f32 HIGHEST reference.
    rel_err = float(jnp.max(jnp.abs(out - ref)) / (jnp.max(jnp.abs(ref)) + 1e-6))
    if rel_err < 3e-2:
        print("KERNEL_OK")
    else:
        raise SystemExit(f"mismatch: rel_err={rel_err}")
</pallas_src>

<mosaic_0001>
module attributes {stable_mosaic.version = 11 : i64} {
  func.func @_fused_stgc_kernel(%arg0: i32, %arg1: memref<64x64xf32, #tpu.memory_space<vmem>>, %arg2: memref<1x64xf32, #tpu.memory_space<vmem>>, %arg3: memref<1x64xf32, #tpu.memory_space<vmem>>, %arg4: memref<64x256xbf16, #tpu.memory_space<vmem>>, %arg5: memref<1x128xf32, #tpu.memory_space<vmem>>, %arg6: memref<128x384xbf16, #tpu.memory_space<vmem>>, %arg7: memref<1x128xf32, #tpu.memory_space<vmem>>, %arg8: memref<1x128xf32, #tpu.memory_space<vmem>>, %arg9: memref<128x128xbf16, #tpu.memory_space<vmem>>, %arg10: memref<1x128xf32, #tpu.memory_space<vmem>>, %arg11: memref<128x384xbf16, #tpu.memory_space<vmem>>, %arg12: memref<1x128xf32, #tpu.memory_space<vmem>>, %arg13: memref<128x512xbf16, #tpu.memory_space<vmem>>, %arg14: memref<1x256xf32, #tpu.memory_space<vmem>>, %arg15: memref<256x768xbf16, #tpu.memory_space<vmem>>, %arg16: memref<1x256xf32, #tpu.memory_space<vmem>>, %arg17: memref<1x256xf32, #tpu.memory_space<vmem>>, %arg18: memref<32x256xf32, #tpu.memory_space<vmem>>) attributes {dimension_semantics = [#tpu.dimension_semantics<parallel>], iteration_bounds = array<i64: 1>, scalar_prefetch = 0 : i64, scratch_operands = 0 : i64, tpu.core_type = #tpu.core_type<tc>, window_params = [{transform_indices = @transform_0, window_bounds = array<i64: 64, 64>}, {pipeline_mode = #tpu.pipeline_mode<synchronous>, transform_indices = @transform_1, window_bounds = array<i64: 1, 64>}, {pipeline_mode = #tpu.pipeline_mode<synchronous>, transform_indices = @transform_2, window_bounds = array<i64: 1, 64>}, {pipeline_mode = #tpu.pipeline_mode<synchronous>, transform_indices = @transform_3, window_bounds = array<i64: 64, 256>}, {pipeline_mode = #tpu.pipeline_mode<synchronous>, transform_indices = @transform_4, window_bounds = array<i64: 1, 128>}, {pipeline_mode = #tpu.pipeline_mode<synchronous>, transform_indices = @transform_5, window_bounds = array<i64: 128, 384>}, {pipeline_mode = #tpu.pipeline_mode<synchronous>, transform_indices = @transform_6, window_bounds = array<i64: 1, 128>}, {pipeline_mode = #tpu.pipeline_mode<synchronous>, transform_indices = @transform_7, window_bounds = array<i64: 1, 128>}, {pipeline_mode = #tpu.pipeline_mode<synchronous>, transform_indices = @transform_8, window_bounds = array<i64: 128, 128>}, {pipeline_mode = #tpu.pipeline_mode<synchronous>, transform_indices = @transform_9, window_bounds = array<i64: 1, 128>}, {pipeline_mode = #tpu.pipeline_mode<synchronous>, transform_indices = @transform_10, window_bounds = array<i64: 128, 384>}, {pipeline_mode = #tpu.pipeline_mode<synchronous>, transform_indices = @transform_11, window_bounds = array<i64: 1, 128>}, {pipeline_mode = #tpu.pipeline_mode<synchronous>, transform_indices = @transform_12, window_bounds = array<i64: 128, 512>}, {pipeline_mode = #tpu.pipeline_mode<synchronous>, transform_indices = @transform_13, window_bounds = array<i64: 1, 256>}, {pipeline_mode = #tpu.pipeline_mode<synchronous>, transform_indices = @transform_14, window_bounds = array<i64: 256, 768>}, {pipeline_mode = #tpu.pipeline_mode<synchronous>, transform_indices = @transform_15, window_bounds = array<i64: 1, 256>}, {pipeline_mode = #tpu.pipeline_mode<synchronous>, transform_indices = @transform_16, window_bounds = array<i64: 1, 256>}, {transform_indices = @transform_17, window_bounds = array<i64: 32, 256>}]} {
    %c0 = arith.constant 0 : index
    %c0_0 = arith.constant 0 : index
    %0 = vector.load %arg1[%c0, %c0_0] : memref<64x64xf32, #tpu.memory_space<vmem>>, vector<64x64xf32>
    %c0_1 = arith.constant 0 : index
    %c0_2 = arith.constant 0 : index
    %1 = vector.load %arg2[%c0_1, %c0_2] : memref<1x64xf32, #tpu.memory_space<vmem>>, vector<1x64xf32>
    %2 = vector.broadcast %1 : vector<1x64xf32> to vector<64x64xf32>
    %3 = arith.mulf %0, %2 : vector<64x64xf32>
    %c0_3 = arith.constant 0 : index
    %c0_4 = arith.constant 0 : index
    %4 = vector.load %arg3[%c0_3, %c0_4] : memref<1x64xf32, #tpu.memory_space<vmem>>, vector<1x64xf32>
    %5 = vector.broadcast %4 : vector<1x64xf32> to vector<64x64xf32>
    %6 = arith.addf %3, %5 : vector<64x64xf32>
    %c0_5 = arith.constant 0 : index
    %c0_6 = arith.constant 0 : index
    %7 = vector.load %arg4[%c0_5, %c0_6] : memref<64x256xbf16, #tpu.memory_space<vmem>>, vector<64x256xbf16>
    %c0_7 = arith.constant 0 : index
    %c0_8 = arith.constant 0 : index
    %8 = vector.load %arg5[%c0_7, %c0_8] : memref<1x128xf32, #tpu.memory_space<vmem>>, vector<1x128xf32>
    %c0_9 = arith.constant 0 : index
    %c0_10 = arith.constant 0 : index
    %9 = vector.load %arg6[%c0_9, %c0_10] : memref<128x384xbf16, #tpu.memory_space<vmem>>, vector<128x384xbf16>
    %c0_11 = arith.constant 0 : index
    %c0_12 = arith.constant 0 : index
    %10 = vector.load %arg7[%c0_11, %c0_12] : memref<1x128xf32, #tpu.memory_space<vmem>>, vector<1x128xf32>
    %c0_13 = arith.constant 0 : index
    %c0_14 = arith.constant 0 : index
    %11 = vector.load %arg8[%c0_13, %c0_14] : memref<1x128xf32, #tpu.memory_space<vmem>>, vector<1x128xf32>
    %12 = arith.truncf %6 : vector<64x64xf32> to vector<64x64xbf16>
    %cst = arith.constant dense<0.000000e+00> : vector<64x256xf32>
    %13 = tpu.matmul %12, %7, %cst {dimension_numbers = #tpu.dot_dimension_numbers<[1], [0], [0], [1], [0, 0, 1, 1], [], []>} : vector<64x64xbf16>, vector<64x256xbf16>, vector<64x256xf32> -> vector<64x256xf32>
    %14 = vector.extract_strided_slice %13 {offsets = [0, 0], sizes = [64, 128], strides = [1, 1]} : vector<64x256xf32> to vector<64x128xf32>
    %15 = vector.broadcast %8 : vector<1x128xf32> to vector<64x128xf32>
    %16 = arith.addf %14, %15 : vector<64x128xf32>
    %cst_15 = arith.constant 0.000000e+00 : f32
    %17 = vector.broadcast %cst_15 : f32 to vector<64x128xf32>
    %18 = arith.maximumf %16, %17 : vector<64x128xf32>
    %19 = arith.truncf %18 : vector<64x128xf32> to vector<64x128xbf16>
    %cst_16 = arith.constant dense<0.000000e+00> : vector<64x384xf32>
    %20 = tpu.matmul %19, %9, %cst_16 {dimension_numbers = #tpu.dot_dimension_numbers<[1], [0], [0], [1], [0, 0, 1, 1], [], []>} : vector<64x128xbf16>, vector<128x384xbf16>, vector<64x384xf32> -> vector<64x384xf32>
    %21 = vector.extract_strided_slice %20 {offsets = [0, 128], sizes = [64, 128], strides = [1, 1]} : vector<64x384xf32> to vector<64x128xf32>
    %22 = vector.extract_strided_slice %20 {offsets = [0, 0], sizes = [64, 128], strides = [1, 1]} : vector<64x384xf32> to vector<64x128xf32>
    %c1_i32 = arith.constant 1 : i32
    %23 = tpu.dynamic_rotate %22 by %c1_i32 dim 0 : vector<64x128xf32>, i32 -> vector<64x128xf32>
    %24 = tpu.iota {dimensions = array<i32: 1>} : vector<2x32x1xi32>
    %25 = vector.shape_cast %24 : vector<2x32x1xi32> to vector<64x1xi32>
    %c-1_i32 = arith.constant -1 : i32
    %26 = vector.broadcast %c-1_i32 : i32 to vector<64x1xi32>
    %27 = arith.addi %25, %26 : vector<64x1xi32>
    %c0_i32 = arith.constant 0 : i32
    %28 = vector.broadcast %c0_i32 : i32 to vector<64x1xi32>
    %29 = arith.cmpi sge, %27, %28 : vector<64x1xi32>
    %c-1_i32_17 = arith.constant -1 : i32
    %30 = vector.broadcast %c-1_i32_17 : i32 to vector<64x1xi32>
    %31 = arith.addi %25, %30 : vector<64x1xi32>
    %c32_i32 = arith.constant 32 : i32
    %32 = vector.broadcast %c32_i32 : i32 to vector<64x1xi32>
    %33 = arith.cmpi slt, %31, %32 : vector<64x1xi32>
    %34 = arith.andi %29, %33 : vector<64x1xi1>
    %cst_18 = arith.constant 0.000000e+00 : f32
    %35 = vector.shape_cast %34 : vector<64x1xi1> to vector<64x1xi1>
    %36 = vector.broadcast %35 : vector<64x1xi1> to vector<64x128xi1>
    %37 = vector.broadcast %cst_18 : f32 to vector<64x128xf32>
    %38 = arith.select %36, %23, %37 : vector<64x128xi1>, vector<64x128xf32>
    %39 = arith.addf %21, %38 : vector<64x128xf32>
    %40 = vector.extract_strided_slice %20 {offsets = [0, 256], sizes = [64, 128], strides = [1, 1]} : vector<64x384xf32> to vector<64x128xf32>
    %c63_i32 = arith.constant 63 : i32
    %41 = tpu.dynamic_rotate %40 by %c63_i32 dim 0 : vector<64x128xf32>, i32 -> vector<64x128xf32>
    %42 = tpu.iota {dimensions = array<i32: 1>} : vector<2x32x1xi32>
    %43 = vector.shape_cast %42 : vector<2x32x1xi32> to vector<64x1xi32>
    %c1_i32_19 = arith.constant 1 : i32
    %44 = vector.broadcast %c1_i32_19 : i32 to vector<64x1xi32>
    %45 = arith.addi %43, %44 : vector<64x1xi32>
    %c0_i32_20 = arith.constant 0 : i32
    %46 = vector.broadcast %c0_i32_20 : i32 to vector<64x1xi32>
    %47 = arith.cmpi sge, %45, %46 : vector<64x1xi32>
    %c1_i32_21 = arith.constant 1 : i32
    %48 = vector.broadcast %c1_i32_21 : i32 to vector<64x1xi32>
    %49 = arith.addi %43, %48 : vector<64x1xi32>
    %c32_i32_22 = arith.constant 32 : i32
    %50 = vector.broadcast %c32_i32_22 : i32 to vector<64x1xi32>
    %51 = arith.cmpi slt, %49, %50 : vector<64x1xi32>
    %52 = arith.andi %47, %51 : vector<64x1xi1>
    %cst_23 = arith.constant 0.000000e+00 : f32
    %53 = vector.shape_cast %52 : vector<64x1xi1> to vector<64x1xi1>
    %54 = vector.broadcast %53 : vector<64x1xi1> to vector<64x128xi1>
    %55 = vector.broadcast %cst_23 : f32 to vector<64x128xf32>
    %56 = arith.select %54, %41, %55 : vector<64x128xi1>, vector<64x128xf32>
    %57 = arith.addf %39, %56 : vector<64x128xf32>
    %58 = vector.broadcast %10 : vector<1x128xf32> to vector<64x128xf32>
    %59 = arith.addf %57, %58 : vector<64x128xf32>
    %cst_24 = arith.constant 0.000000e+00 : f32
    %60 = vector.broadcast %cst_24 : f32 to vector<64x128xf32>
    %61 = arith.maximumf %59, %60 : vector<64x128xf32>
    %62 = vector.extract_strided_slice %13 {offsets = [0, 128], sizes = [64, 128], strides = [1, 1]} : vector<64x256xf32> to vector<64x128xf32>
    %63 = vector.broadcast %11 : vector<1x128xf32> to vector<64x128xf32>
    %64 = arith.addf %62, %63 : vector<64x128xf32>
    %65 = arith.addf %61, %64 : vector<64x128xf32>
    %c0_25 = arith.constant 0 : index
    %c0_26 = arith.constant 0 : index
    %66 = vector.load %arg9[%c0_25, %c0_26] : memref<128x128xbf16, #tpu.memory_space<vmem>>, vector<128x128xbf16>
    %c0_27 = arith.constant 0 : index
    %c0_28 = arith.constant 0 : index
    %67 = vector.load %arg10[%c0_27, %c0_28] : memref<1x128xf32, #tpu.memory_space<vmem>>, vector<1x128xf32>
    %c0_29 = arith.constant 0 : index
    %c0_30 = arith.constant 0 : index
    %68 = vector.load %arg11[%c0_29, %c0_30] : memref<128x384xbf16, #tpu.memory_space<vmem>>, vector<128x384xbf16>
    %c0_31 = arith.constant 0 : index
    %c0_32 = arith.constant 0 : index
    %69 = vector.load %arg12[%c0_31, %c0_32] : memref<1x128xf32, #tpu.memory_space<vmem>>, vector<1x128xf32>
    %70 = arith.truncf %65 : vector<64x128xf32> to vector<64x128xbf16>
    %cst_33 = arith.constant dense<0.000000e+00> : vector<64x128xf32>
    %71 = tpu.matmul %70, %66, %cst_33 {dimension_numbers = #tpu.dot_dimension_numbers<[1], [0], [0], [1], [0, 0, 1, 1], [], []>} : vector<64x128xbf16>, vector<128x128xbf16>, vector<64x128xf32> -> vector<64x128xf32>
    %72 = vector.broadcast %67 : vector<1x128xf32> to vector<64x128xf32>
    %73 = arith.addf %71, %72 : vector<64x128xf32>
    %cst_34 = arith.constant 0.000000e+00 : f32
    %74 = vector.broadcast %cst_34 : f32 to vector<64x128xf32>
    %75 = arith.maximumf %73, %74 : vector<64x128xf32>
    %76 = arith.truncf %75 : vector<64x128xf32> to vector<64x128xbf16>
    %cst_35 = arith.constant dense<0.000000e+00> : vector<64x384xf32>
    %77 = tpu.matmul %76, %68, %cst_35 {dimension_numbers = #tpu.dot_dimension_numbers<[1], [0], [0], [1], [0, 0, 1, 1], [], []>} : vector<64x128xbf16>, vector<128x384xbf16>, vector<64x384xf32> -> vector<64x384xf32>
    %78 = vector.extract_strided_slice %77 {offsets = [0, 128], sizes = [64, 128], strides = [1, 1]} : vector<64x384xf32> to vector<64x128xf32>
    %79 = vector.extract_strided_slice %77 {offsets = [0, 0], sizes = [64, 128], strides = [1, 1]} : vector<64x384xf32> to vector<64x128xf32>
    %c1_i32_36 = arith.constant 1 : i32
    %80 = tpu.dynamic_rotate %79 by %c1_i32_36 dim 0 : vector<64x128xf32>, i32 -> vector<64x128xf32>
    %cst_37 = arith.constant 0.000000e+00 : f32
    %81 = vector.shape_cast %34 : vector<64x1xi1> to vector<64x1xi1>
    %82 = vector.broadcast %81 : vector<64x1xi1> to vector<64x128xi1>
    %83 = vector.broadcast %cst_37 : f32 to vector<64x128xf32>
    %84 = arith.select %82, %80, %83 : vector<64x128xi1>, vector<64x128xf32>
    %85 = arith.addf %78, %84 : vector<64x128xf32>
    %86 = vector.extract_strided_slice %77 {offsets = [0, 256], sizes = [64, 128], strides = [1, 1]} : vector<64x384xf32> to vector<64x128xf32>
    %c63_i32_38 = arith.constant 63 : i32
    %87 = tpu.dynamic_rotate %86 by %c63_i32_38 dim 0 : vector<64x128xf32>, i32 -> vector<64x128xf32>
    %cst_39 = arith.constant 0.000000e+00 : f32
    %88 = vector.shape_cast %52 : vector<64x1xi1> to vector<64x1xi1>
    %89 = vector.broadcast %88 : vector<64x1xi1> to vector<64x128xi1>
    %90 = vector.broadcast %cst_39 : f32 to vector<64x128xf32>
    %91 = arith.select %89, %87, %90 : vector<64x128xi1>, vector<64x128xf32>
    %92 = arith.addf %85, %91 : vector<64x128xf32>
    %93 = vector.broadcast %69 : vector<1x128xf32> to vector<64x128xf32>
    %94 = arith.addf %92, %93 : vector<64x128xf32>
    %cst_40 = arith.constant 0.000000e+00 : f32
    %95 = vector.broadcast %cst_40 : f32 to vector<64x128xf32>
    %96 = arith.maximumf %94, %95 : vector<64x128xf32>
    %97 = arith.addf %96, %65 : vector<64x128xf32>
    %c0_41 = arith.constant 0 : index
    %c0_42 = arith.constant 0 : index
    %98 = vector.load %arg13[%c0_41, %c0_42] : memref<128x512xbf16, #tpu.memory_space<vmem>>, vector<128x512xbf16>
    %c0_43 = arith.constant 0 : index
    %c0_44 = arith.constant 0 : index
    %99 = vector.load %arg14[%c0_43, %c0_44] : memref<1x256xf32, #tpu.memory_space<vmem>>, vector<1x256xf32>
    %c0_45 = arith.constant 0 : index
    %c0_46 = arith.constant 0 : index
    %100 = vector.load %arg15[%c0_45, %c0_46] : memref<256x768xbf16, #tpu.memory_space<vmem>>, vector<256x768xbf16>
    %c0_47 = arith.constant 0 : index
    %c0_48 = arith.constant 0 : index
    %101 = vector.load %arg16[%c0_47, %c0_48] : memref<1x256xf32, #tpu.memory_space<vmem>>, vector<1x256xf32>
    %c0_49 = arith.constant 0 : index
    %c0_50 = arith.constant 0 : index
    %102 = vector.load %arg17[%c0_49, %c0_50] : memref<1x256xf32, #tpu.memory_space<vmem>>, vector<1x256xf32>
    %103 = arith.truncf %97 : vector<64x128xf32> to vector<64x128xbf16>
    %cst_51 = arith.constant dense<0.000000e+00> : vector<64x512xf32>
    %104 = tpu.matmul %103, %98, %cst_51 {dimension_numbers = #tpu.dot_dimension_numbers<[1], [0], [0], [1], [0, 0, 1, 1], [], []>} : vector<64x128xbf16>, vector<128x512xbf16>, vector<64x512xf32> -> vector<64x512xf32>
    %105 = vector.extract_strided_slice %104 {offsets = [0, 0], sizes = [64, 256], strides = [1, 1]} : vector<64x512xf32> to vector<64x256xf32>
    %106 = vector.broadcast %99 : vector<1x256xf32> to vector<64x256xf32>
    %107 = arith.addf %105, %106 : vector<64x256xf32>
    %cst_52 = arith.constant 0.000000e+00 : f32
    %108 = vector.broadcast %cst_52 : f32 to vector<64x256xf32>
    %109 = arith.maximumf %107, %108 : vector<64x256xf32>
    %110 = arith.truncf %109 : vector<64x256xf32> to vector<64x256xbf16>
    %cst_53 = arith.constant dense<0.000000e+00> : vector<64x768xf32>
    %111 = tpu.matmul %110, %100, %cst_53 {dimension_numbers = #tpu.dot_dimension_numbers<[1], [0], [0], [1], [0, 0, 1, 1], [], []>} : vector<64x256xbf16>, vector<256x768xbf16>, vector<64x768xf32> -> vector<64x768xf32>
    %112 = vector.extract_strided_slice %111 {offsets = [0, 256], sizes = [64, 256], strides = [1, 1]} : vector<64x768xf32> to vector<64x256xf32>
    %113 = vector.extract_strided_slice %111 {offsets = [0, 0], sizes = [64, 256], strides = [1, 1]} : vector<64x768xf32> to vector<64x256xf32>
    %c1_i32_54 = arith.constant 1 : i32
    %114 = tpu.dynamic_rotate %113 by %c1_i32_54 dim 0 : vector<64x256xf32>, i32 -> vector<64x256xf32>
    %cst_55 = arith.constant 0.000000e+00 : f32
    %115 = vector.shape_cast %34 : vector<64x1xi1> to vector<64x1xi1>
    %116 = vector.broadcast %115 : vector<64x1xi1> to vector<64x256xi1>
    %117 = vector.broadcast %cst_55 : f32 to vector<64x256xf32>
    %118 = arith.select %116, %114, %117 : vector<64x256xi1>, vector<64x256xf32>
    %119 = arith.addf %112, %118 : vector<64x256xf32>
    %120 = vector.extract_strided_slice %111 {offsets = [0, 512], sizes = [64, 256], strides = [1, 1]} : vector<64x768xf32> to vector<64x256xf32>
    %c63_i32_56 = arith.constant 63 : i32
    %121 = tpu.dynamic_rotate %120 by %c63_i32_56 dim 0 : vector<64x256xf32>, i32 -> vector<64x256xf32>
    %cst_57 = arith.constant 0.000000e+00 : f32
    %122 = vector.shape_cast %52 : vector<64x1xi1> to vector<64x1xi1>
    %123 = vector.broadcast %122 : vector<64x1xi1> to vector<64x256xi1>
    %124 = vector.broadcast %cst_57 : f32 to vector<64x256xf32>
    %125 = arith.select %123, %121, %124 : vector<64x256xi1>, vector<64x256xf32>
    %126 = arith.addf %119, %125 : vector<64x256xf32>
    %127 = vector.broadcast %101 : vector<1x256xf32> to vector<64x256xf32>
    %128 = arith.addf %126, %127 : vector<64x256xf32>
    %129 = vector.shape_cast %128 : vector<64x256xf32> to vector<32x2x256xf32>
    %130 = vector.extract_strided_slice %129 {offsets = [0, 0, 0], sizes = [32, 1, 256], strides = [1, 1, 1]} : vector<32x2x256xf32> to vector<32x1x256xf32>
    %131 = vector.shape_cast %130 : vector<32x1x256xf32> to vector<32x256xf32>
    %cst_58 = arith.constant 0.000000e+00 : f32
    %132 = vector.broadcast %cst_58 : f32 to vector<32x256xf32>
    %133 = arith.maximumf %131, %132 : vector<32x256xf32>
    %134 = vector.extract_strided_slice %104 {offsets = [0, 256], sizes = [64, 256], strides = [1, 1]} : vector<64x512xf32> to vector<64x256xf32>
    %135 = vector.shape_cast %134 : vector<64x256xf32> to vector<32x2x256xf32>
    %136 = vector.extract_strided_slice %135 {offsets = [0, 0, 0], sizes = [32, 1, 256], strides = [1, 1, 1]} : vector<32x2x256xf32> to vector<32x1x256xf32>
    %137 = vector.shape_cast %136 : vector<32x1x256xf32> to vector<32x256xf32>
    %138 = vector.broadcast %102 : vector<1x256xf32> to vector<32x256xf32>
    %139 = arith.addf %137, %138 : vector<32x256xf32>
    %140 = arith.addf %133, %139 : vector<32x256xf32>
    %c0_59 = arith.constant 0 : index
    %c0_60 = arith.constant 0 : index
    %141 = vector.load %arg18[%c0_59, %c0_60] : memref<32x256xf32, #tpu.memory_space<vmem>>, vector<32x256xf32>
    tpu.vector_store %arg18[%c0_59, %c0_60], %140 {strides = array<i32>} : memref<32x256xf32, #tpu.memory_space<vmem>>, vector<32x256xf32>,
    return
  }
  func.func @transform_0(%arg0: i32) -> (i32, i32) {
    %c0_i32 = arith.constant 0 : i32
    %c0_i32_0 = arith.constant 0 : i32
    return %arg0, %c0_i32 : i32, i32
  }
  func.func @transform_1(%arg0: i32) -> (i32, i32) {
    %c0_i32 = arith.constant 0 : i32
    %c0_i32_0 = arith.constant 0 : i32
    %c0_i32_1 = arith.constant 0 : i32
    return %c0_i32, %c0_i32_0 : i32, i32
  }
  func.func @transform_2(%arg0: i32) -> (i32, i32) {
    %c0_i32 = arith.constant 0 : i32
    %c0_i32_0 = arith.constant 0 : i32
    %c0_i32_1 = arith.constant 0 : i32
    return %c0_i32, %c0_i32_0 : i32, i32
  }
  func.func @transform_3(%arg0: i32) -> (i32, i32) {
    %c0_i32 = arith.constant 0 : i32
    %c0_i32_0 = arith.constant 0 : i32
    %c0_i32_1 = arith.constant 0 : i32
    return %c0_i32, %c0_i32_0 : i32, i32
  }
  func.func @transform_4(%arg0: i32) -> (i32, i32) {
    %c0_i32 = arith.constant 0 : i32
    %c0_i32_0 = arith.constant 0 : i32
    %c0_i32_1 = arith.constant 0 : i32
    return %c0_i32, %c0_i32_0 : i32, i32
  }
  func.func @transform_5(%arg0: i32) -> (i32, i32) {
    %c0_i32 = arith.constant 0 : i32
    %c0_i32_0 = arith.constant 0 : i32
    %c0_i32_1 = arith.constant 0 : i32
    return %c0_i32, %c0_i32_0 : i32, i32
  }
  func.func @transform_6(%arg0: i32) -> (i32, i32) {
    %c0_i32 = arith.constant 0 : i32
    %c0_i32_0 = arith.constant 0 : i32
    %c0_i32_1 = arith.constant 0 : i32
    return %c0_i32, %c0_i32_0 : i32, i32
  }
  func.func @transform_7(%arg0: i32) -> (i32, i32) {
    %c0_i32 = arith.constant 0 : i32
    %c0_i32_0 = arith.constant 0 : i32
    %c0_i32_1 = arith.constant 0 : i32
    return %c0_i32, %c0_i32_0 : i32, i32
  }
  func.func @transform_8(%arg0: i32) -> (i32, i32) {
    %c0_i32 = arith.constant 0 : i32
    %c0_i32_0 = arith.constant 0 : i32
    %c0_i32_1 = arith.constant 0 : i32
    return %c0_i32, %c0_i32_0 : i32, i32
  }
  func.func @transform_9(%arg0: i32) -> (i32, i32) {
    %c0_i32 = arith.constant 0 : i32
    %c0_i32_0 = arith.constant 0 : i32
    %c0_i32_1 = arith.constant 0 : i32
    return %c0_i32, %c0_i32_0 : i32, i32
  }
  func.func @transform_10(%arg0: i32) -> (i32, i32) {
    %c0_i32 = arith.constant 0 : i32
    %c0_i32_0 = arith.constant 0 : i32
    %c0_i32_1 = arith.constant 0 : i32
    return %c0_i32, %c0_i32_0 : i32, i32
  }
  func.func @transform_11(%arg0: i32) -> (i32, i32) {
    %c0_i32 = arith.constant 0 : i32
    %c0_i32_0 = arith.constant 0 : i32
    %c0_i32_1 = arith.constant 0 : i32
    return %c0_i32, %c0_i32_0 : i32, i32
  }
  func.func @transform_12(%arg0: i32) -> (i32, i32) {
    %c0_i32 = arith.constant 0 : i32
    %c0_i32_0 = arith.constant 0 : i32
    %c0_i32_1 = arith.constant 0 : i32
    return %c0_i32, %c0_i32_0 : i32, i32
  }
  func.func @transform_13(%arg0: i32) -> (i32, i32) {
    %c0_i32 = arith.constant 0 : i32
    %c0_i32_0 = arith.constant 0 : i32
    %c0_i32_1 = arith.constant 0 : i32
    return %c0_i32, %c0_i32_0 : i32, i32
  }
  func.func @transform_14(%arg0: i32) -> (i32, i32) {
    %c0_i32 = arith.constant 0 : i32
    %c0_i32_0 = arith.constant 0 : i32
    %c0_i32_1 = arith.constant 0 : i32
    return %c0_i32, %c0_i32_0 : i32, i32
  }
  func.func @transform_15(%arg0: i32) -> (i32, i32) {
    %c0_i32 = arith.constant 0 : i32
    %c0_i32_0 = arith.constant 0 : i32
    %c0_i32_1 = arith.constant 0 : i32
    return %c0_i32, %c0_i32_0 : i32, i32
  }
  func.func @transform_16(%arg0: i32) -> (i32, i32) {
    %c0_i32 = arith.constant 0 : i32
    %c0_i32_0 = arith.constant 0 : i32
    %c0_i32_1 = arith.constant 0 : i32
    return %c0_i32, %c0_i32_0 : i32, i32
  }
  func.func @transform_17(%arg0: i32) -> (i32, i32) {
    %c0_i32 = arith.constant 0 : i32
    %c0_i32_0 = arith.constant 0 : i32
    return %arg0, %c0_i32 : i32, i32
  }
}

</mosaic_0001>

<bundles_post_ra>
// kernel: tpu_custom_call.1
= control target key start
LH: loop header
LB: loop body
LE: loop exit
PB: predicated region body
PF: predicated region fallthrough
CT: control target
= control target key end

     0   :  { %s5608_s0 = inlined_call_operand.hbm [shape: f32[64,64], index: 0, kind: input, shape index: {}]   ;;  %s5609_s1 = inlined_call_operand.vmem [shape: f32[1,64], index: 1, kind: input, shape index: {}]   ;;  %s5610_s2 = inlined_call_operand.hbm [shape: f32[1,64], index: 2, kind: input, shape index: {}]   ;;  %s5611_s3 = inlined_call_operand.hbm [shape: bf16[64,256], index: 3, kind: input, shape index: {}]   ;;  %s5612_s4 = inlined_call_operand.hbm [shape: f32[1,128], index: 4, kind: input, shape index: {}]   ;;  %s5613_s5 = inlined_call_operand.hbm [shape: bf16[128,384], index: 5, kind: input, shape index: {}]   ;;  %s5614_s6 = inlined_call_operand.vmem [shape: f32[1,128], index: 6, kind: input, shape index: {}]   ;;  %s5615_s7 = inlined_call_operand.vmem [shape: f32[1,128], index: 7, kind: input, shape index: {}]   ;;  %s5616_s8 = inlined_call_operand.hbm [shape: bf16[128,128], index: 8, kind: input, shape index: {}]   ;;  %s5617_s9 = inlined_call_operand.vmem [shape: f32[1,128], index: 9, kind: input, shape index: {}]   ;;  %s5618_s10 = inlined_call_operand.hbm [shape: bf16[128,384], index: 10, kind: input, shape index: {}]   ;;  %s5619_s11 = inlined_call_operand.vmem [shape: f32[1,128], index: 11, kind: input, shape index: {}]   ;;  %s5620_s12 = inlined_call_operand.hbm [shape: bf16[128,512], index: 12, kind: input, shape index: {}]   ;;  %s5621_s13 = inlined_call_operand.vmem [shape: f32[1,256], index: 13, kind: input, shape index: {}]   ;;  %s5622_s14 = inlined_call_operand.hbm [shape: bf16[256,768], index: 14, kind: input, shape index: {}]   ;;  %s5623_s15 = inlined_call_operand.vmem [shape: f32[1,256], index: 15, kind: input, shape index: {}]   ;;  %s5624_s16 = inlined_call_operand.vmem [shape: f32[1,256], index: 16, kind: input, shape index: {}]   ;;  %s5625_s17 = inlined_call_operand.hbm [shape: f32[32,256], index: 17, kind: output, shape index: {}]  }
   0x1   :  { %5647 = sst [smem:[#allocation47_spill]] %s5608_s0 }
   0x2   :  { %5648 = sst [smem:[#allocation48_spill]] %s5609_s1 }
   0x3   :  { %22 = vsyncpa [#allocation3], 0 }
   0x4   :  { %23 = vsyncpa [#allocation6], 0 }
   0x5   :  { %24 = vsyncpa [#allocation9], 0 }
   0x6   :  { %25 = vsyncpa [#allocation12], 0 }
   0x7   :  { %26 = vsyncpa [#allocation15], 0 }
   0x8   :  { %27 = vsyncpa [#allocation4], 0  ;;  %s4461_s24 = smov [#allocation5]   ;;  %s4462_s26 = smov [#allocation8]  }
   0x9   :  { %s48_s25 = sshll.u32 %s4461_s24, 4  ;;  %s70_s27 = sshll.u32 %s4462_s26, 4  ;;  %s49_s25 = int_to_ptr.vmem [resolvable:$true] %s48_s25  ;;  %s71_s27 = int_to_ptr.vmem [resolvable:$true] %s70_s27 }
   0xa   :  { %s4257_s28 = scalar_lea.vmem %s49_s25, 16  ;;  %s4261_s29 = scalar_lea.vmem %s49_s25, 32 }
   0xb   :  { %p4258_p0 = scmp.ne.s32.totalorder %s49_s25, %s4257_s28  ;;  %p4262_p1 = scmp.lt.s32.totalorder %s49_s25, %s49_s25 }
   0xc   :  { %p4263_p2 = scmp.lt.s32.totalorder %s4261_s29, %s4257_s28 }
   0xe   :  { %p4264_p3 = por %p4263_p2, %p4262_p1 }
  0x10   :  { %p4265_p4 = pnand %p4264_p3, %p4258_p0 }
  0x12   :  { %4268 = shalt.err (!%p4265_p4)
}
  0x13   :  { %51 = dma.hbm_to_vmem [thread:$0]  %s5610_s2, 16, %s49_s25, [#allocation6]  }
  0x14   :  { %s4277_s18 = scalar_lea.vmem %s71_s27, 16  ;;  %s4281_s19 = scalar_lea.vmem %s71_s27, 32 }
  0x15   :  { %p4278_p5 = scmp.ne.s32.totalorder %s71_s27, %s4277_s18  ;;  %p4282_p6 = scmp.lt.s32.totalorder %s71_s27, %s71_s27 }
  0x16   :  { %p4283_p7 = scmp.lt.s32.totalorder %s4281_s19, %s4277_s18 }
  0x18   :  { %p4284_p8 = por %p4283_p7, %p4282_p6 }
  0x1a   :  { %p4285_p9 = pnand %p4284_p8, %p4278_p5 }
  0x1c   :  { %4288 = shalt.err (!%p4285_p9)
}
  0x1d   :  { %73 = dma.hbm_to_vmem [thread:$0]  %s5612_s4, 16, %s71_s27, [#allocation9]  }
  0x1e   :  { %s4463_s21 = smov [#allocation11]  }
  0x1f   :  { %s95_s22 = sshll.u32 %s4463_s21, 4  ;;  %s96_s22 = int_to_ptr.vmem [resolvable:$true] %s95_s22 }
  0x20   :  { %s4297_s23 = scalar_lea.vmem %s96_s22, 1024  ;;  %p4302_p11 = scmp.lt.s32.totalorder %s96_s22, %s96_s22 }
  0x21   :  { %p4298_p10 = scmp.ne.s32.totalorder %s96_s22, %s4297_s23  ;;  %p4303_p12 = scmp.lt.s32.totalorder %s4297_s23, %s4297_s23 }
  0x23   :  { %p4304_p13 = por %p4303_p12, %p4302_p11 }
  0x25   :  { %p4305_p0 = pnand %p4304_p13, %p4298_p10 }
  0x27   :  { %4308 = shalt.err (!%p4305_p0)
}
  0x28   :  { %s4464_s2 = smov 64   ;;  %s4465_s24 = smov 4  }
  0x29   :  { %101 = dma.hbm_to_vmem [thread:$0]  %s5616_s8, 1024, %s96_s22, [#allocation12], %s4464_s2, %s4464_s2, %s4465_s24  }
  0x2a   :  { %s4466_s28 = smov [#allocation14]  }
  0x2b   :  { %s123_s29 = sshll.u32 %s4466_s28, 4  ;;  %s124_s29 = int_to_ptr.vmem [resolvable:$true] %s123_s29 }
  0x2c   :  { %s4317_s4 = scalar_lea.vmem %s124_s29, 4096  ;;  %p4322_p2 = scmp.lt.s32.totalorder %s124_s29, %s124_s29 }
  0x2d   :  { %p4318_p1 = scmp.ne.s32.totalorder %s124_s29, %s4317_s4  ;;  %p4323_p3 = scmp.lt.s32.totalorder %s4317_s4, %s4317_s4 }
  0x2f   :  { %p4324_p4 = por %p4323_p3, %p4322_p2 }
  0x31   :  { %p4325_p5 = pnand %p4324_p4, %p4318_p1 }
  0x33   :  { %4328 = shalt.err (!%p4325_p5)
}
  0x34   :  { %s4467_s27 = smov 256   ;;  %s4468_s0 = smov 16  }
  0x35   :  { %129 = dma.hbm_to_vmem [thread:$0]  %s5620_s12, 4096, %s124_s29, [#allocation15], %s4467_s27, %s4467_s27, %s4468_s0  }
  0x36   :  { %s4469_s8 = smov [#allocation2]  }
  0x37   :  { %s33_s19 = sshll.u32 %s4469_s8, 4  ;;  %s34_s19 = int_to_ptr.vmem [resolvable:$true] %s33_s19 }
  0x38   :  { %s4337_s1 = scalar_lea.vmem %s34_s19, 1024  ;;  %p4342_p7 = scmp.lt.s32.totalorder %s34_s19, %s34_s19 }
  0x39   :  { %p4338_p6 = scmp.ne.s32.totalorder %s34_s19, %s4337_s1  ;;  %p4343_p8 = scmp.lt.s32.totalorder %s4337_s1, %s4337_s1 }
  0x3b   :  { %p4344_p9 = por %p4343_p8, %p4342_p7 }
  0x3d   :  { %p4345_p10 = pnand %p4344_p9, %p4338_p6 }
  0x3f   :  { %4348 = shalt.err (!%p4345_p10)
}
  0x40   :  { %s4470_s20 = smov 128   ;;  %s4471_s21 = smov 8  }
  0x41   :  { %s5649_s2 = sld [smem:[#allocation47_spill]]  ;;  %s4472_s24 = smov [#allocation7]  }
  0x42   :  { %s57_s25 = sshll.u32 %s4472_s24, 4  ;;  %s4473_s12 = smov [#allocation10]   ;;  %s58_s25 = int_to_ptr.vmem [resolvable:$true] %s57_s25 }
  0x43   :  { %s79_s26 = sshll.u32 %s4473_s12, 4  ;;  %s4357_s28 = scalar_lea.vmem %s58_s25, 1024  ;;  %s80_s26 = int_to_ptr.vmem [resolvable:$true] %s79_s26 }
  0x44   :  { %p4358_p11 = scmp.ne.s32.totalorder %s58_s25, %s4357_s28  ;;  %p4362_p12 = scmp.lt.s32.totalorder %s58_s25, %s58_s25 }
  0x45   :  { %p4363_p13 = scmp.lt.s32.totalorder %s4357_s28, %s4357_s28 }
  0x47   :  { %39 = dma.hbm_to_vmem [thread:$0]  %s5649_s2, 1024, %s34_s19, [#allocation3], %s4470_s20, %s4470_s20, %s4471_s21  }
  0x48   :  { %p4364_p0 = por %p4363_p13, %p4362_p12 }
  0x4a   :  { %p4365_p1 = pnand %p4364_p0, %p4358_p11 }
  0x4c   :  { %4368 = shalt.err (!%p4365_p1)
}
  0x4d   :  { %63 = dma.hbm_to_vmem [thread:$0]  %s5611_s3, 1024, %s58_s25, [#allocation6], %s4470_s20, %s4470_s20, %s4471_s21  }
  0x4e   :  { %s4377_s30 = scalar_lea.vmem %s80_s26, 3072  ;;  %p4382_p3 = scmp.lt.s32.totalorder %s80_s26, %s80_s26 }
  0x4f   :  { %p4378_p2 = scmp.ne.s32.totalorder %s80_s26, %s4377_s30  ;;  %p4383_p4 = scmp.lt.s32.totalorder %s4377_s30, %s4377_s30 }
  0x51   :  { %p4384_p5 = por %p4383_p4, %p4382_p3 }
  0x53   :  { %p4385_p6 = pnand %p4384_p5, %p4378_p2 }
  0x55   :  { %4388 = shalt.err (!%p4385_p6)
}
  0x56   :  { %s4474_s18 = smov 192   ;;  %s4475_s8 = smov 12  }
  0x57   :  { %85 = dma.hbm_to_vmem [thread:$0]  %s5613_s5, 3072, %s80_s26, [#allocation9], %s4474_s18, %s4474_s18, %s4475_s8  }
  0x58   :  { %s4476_s22 = smov [#allocation13]   ;;  %s4477_s2 = smov [#allocation16]  }
  0x59   :  { %s109_s23 = sshll.u32 %s4476_s22, 4  ;;  %s137_s24 = sshll.u32 %s4477_s2, 4  ;;  %s110_s23 = int_to_ptr.vmem [resolvable:$true] %s109_s23  ;;  %s138_s24 = int_to_ptr.vmem [resolvable:$true] %s137_s24 }
  0x5a   :  { %s4397_s3 = scalar_lea.vmem %s110_s23, 3072  ;;  %p4402_p8 = scmp.lt.s32.totalorder %s110_s23, %s110_s23 }
  0x5b   :  { %p4398_p7 = scmp.ne.s32.totalorder %s110_s23, %s4397_s3  ;;  %p4403_p9 = scmp.lt.s32.totalorder %s4397_s3, %s4397_s3 }
  0x5d   :  { %p4404_p10 = por %p4403_p9, %p4402_p8 }
  0x5f   :  { %p4405_p11 = pnand %p4404_p10, %p4398_p7 }
  0x61   :  { %4408 = shalt.err (!%p4405_p11)
}
  0x62   :  { %115 = dma.hbm_to_vmem [thread:$0]  %s5618_s10, 3072, %s110_s23, [#allocation12], %s4474_s18, %s4474_s18, %s4475_s8  }
  0x63   :  { %s4417_s25 = scalar_lea.vmem %s138_s24, 12288  ;;  %p4422_p13 = scmp.lt.s32.totalorder %s138_s24, %s138_s24 }
  0x64   :  { %p4418_p12 = scmp.ne.s32.totalorder %s138_s24, %s4417_s25  ;;  %p4423_p0 = scmp.lt.s32.totalorder %s4417_s25, %s4417_s25 }
  0x66   :  { %p4424_p1 = por %p4423_p0, %p4422_p13 }
  0x68   :  { %p4425_p2 = pnand %p4424_p1, %p4418_p12 }
  0x6a   :  { %4428 = shalt.err (!%p4425_p2)
}
  0x6b   :  { %s4478_s5 = smov 384   ;;  %s4479_s12 = smov 24  }
  0x6c   :  { %143 = dma.hbm_to_vmem [thread:$0]  %s5622_s14, 12288, %s138_s24, [#allocation15], %s4478_s5, %s4478_s5, %s4479_s12  }
  0x6d   :  { %4449 = dma.done.wait [#allocation3], 1024  }
  0x6e   :  { %4450 = vsyncadd [#allocation3], 4294966272 }
  0x6f   :  { %4451 = dma.done.wait [#allocation6], 1040  }
  0x70   :  { %4452 = vsyncadd [#allocation6], 4294966256 }
  0x71   :  { %4453 = dma.done.wait [#allocation9], 3088  }
  0x72   :  { %4454 = vsyncadd [#allocation9], 4294964208 }
  0x73   :  { %4455 = dma.done.wait [#allocation12], 4096  }
  0x74   :  { %4456 = vsyncadd [#allocation12], 4294963200 }
  0x75   :  { %4457 = dma.done.wait [#allocation15], 16384  }
  0x76   :  { %4458 = vsyncadd [#allocation15], 4294950912  ;;  %v4480_v0 = vmov 0   ;;  %v3973_v1 = vld [vmem:[#allocation7 + $0x34] ss:$8 sps:$4 sm:$0xff]   ;;  %v177_v7 = vld [vmem:[#allocation2 + $0x8] sm:$0xff] }
  0x77   :  { %346 = vmatprep.mubr.bf16.mxu1 %v4480_v0  ;;  %v3975_v2 = vld [vmem:[#allocation7 + $0x30] ss:$8 sps:$4 sm:$0xff]   ;;  %322 = vmatprep.subr.bf16.mxu1 %v3973_v1  ;;  %v3976_v3 = vld [vmem:[#allocation7 + $0x24] ss:$8 sps:$4 sm:$0xff]   ;;  %v3978_v4 = vld [vmem:[#allocation7 + $0x20] ss:$8 sps:$4 sm:$0xff]  }
  0x78   :  { %323 = vmatpush1.bf16.msra.mxu1 %v3975_v2  ;;  %v3979_v5 = vld [vmem:[#allocation7 + $0x14] ss:$8 sps:$4 sm:$0xff]   ;;  %s5650_s29 = sld [smem:[#allocation48_spill]]  ;;  %v3981_v9 = vld [vmem:[#allocation7 + $0x10] ss:$8 sps:$4 sm:$0xff]   ;;  %vm301_vm0 = vcmask 523264  }
  0x79   :  { %324 = vmatprep.subr.bf16.mxu1 %v3976_v3  ;;  %v176_v6 = vld [vmem:[#allocation2] sm:$0xff]  ;;  %v178_v17 = vld [vmem:[#allocation2 + $0x10] sm:$0xff]  ;;  %v179_v18 = vld [vmem:[#allocation2 + $0x18] sm:$0xff]  ;;  %vm3540_vm5 = vcmask 1041409   ;;  %vm3542_vm6 = vcmask 1042434   ;;  %vm3544_vm7 = vcmask 1043459  }
  0x7a   :  { %v4611_v12 = vld [vmem:[#allocation5] ss:$0 sm:$0xff]  ;;  %v3982_v13 = vld [vmem:[#allocation7 + $0x4] ss:$8 sps:$4 sm:$0xff]   ;;  %v3984_v14 = vld [vmem:[#allocation7] ss:$8 sps:$4 sm:$0xff]  }
  0x7b   :  { %v3987_v19 = vld [vmem:[#allocation10 + $0xac] ss:$12 sps:$4 sm:$0xff]   ;;  %v3994_v20 = vld [vmem:[#allocation10 + $0xb0] ss:$12 sps:$4 sm:$0xff]   ;;  %v3985_v24 = vld [vmem:[#allocation10 + $0xa8] ss:$12 sps:$4 sm:$0xff]  }
  0x7c   :  { %325 = vmatpush1.bf16.msra.mxu1 %v3978_v4  ;;  %3879 = vmatprep.subr.bf16.mxu0 %v3994_v20  ;;  %v3998_v25 = vld [vmem:[#allocation10 + $0x98] ss:$12 sps:$4 sm:$0xff]   ;;  %v3990_v26 = vld [vmem:[#allocation10 + $0x94] ss:$12 sps:$4 sm:$0xff]   ;;  %v3988_v32 = vld [vmem:[#allocation10 + $0x90] ss:$12 sps:$4 sm:$0xff]  }
  0x7d   :  { %326 = vmatprep.subr.bf16.mxu1 %v3979_v5  ;;  %3880 = vmatpush3.bf16.msra.mxu0 %v3994_v20  ;;  %v180_v27 = vld [vmem:[#allocation2 + $0x20] sm:$0xff]  ;;  %v181_v31 = vld [vmem:[#allocation2 + $0x28] sm:$0xff]  ;;  %v182_v40 = vld [vmem:[#allocation2 + $0x30] sm:$0xff]  ;;  %vm3546_vm8 = vcmask 1044484   ;;  %vm3548_vm9 = vcmask 1045509   ;;  %vm3550_vm10 = vcmask 1046534  }
  0x7e   :  { %v4607_v8 = vld [vmem:[%s5650_s29] ss:$0 sm:$0xff]  ;;  %3881 = vmatprep.subr.bf16.mxu0 %v3998_v25  ;;  %v4002_v30 = vld [vmem:[#allocation10 + $0x80] ss:$12 sps:$4 sm:$0xff]   ;;  %v4006_v34 = vld [vmem:[#allocation10 + $0x68] ss:$12 sps:$4 sm:$0xff]  }
  0x7f   :  { %v191_v10 = vmul.f32 %v4607_v8, %v176_v6  ;;  %v192_v11 = vmul.f32 %v4607_v8, %v177_v7  ;;  %v193_v22 = vmul.f32 %v4607_v8, %v178_v17  ;;  %v194_v23 = vmul.f32 %v4607_v8, %v179_v18  ;;  %v3993_v33 = vld [vmem:[#allocation10 + $0x7c] ss:$12 sps:$4 sm:$0xff]   ;;  %v3991_v35 = vld [vmem:[#allocation10 + $0x78] ss:$12 sps:$4 sm:$0xff]   ;;  %v3995_v42 = vld [vmem:[#allocation10 + $0x60] ss:$12 sps:$4 sm:$0xff]  }
  0x80   :  { %327 = vmatpush1.bf16.msra.mxu1 %v3981_v9  ;;  %v195_v37 = vmul.f32 %v4607_v8, %v180_v27  ;;  %v196_v38 = vmul.f32 %v4607_v8, %v181_v31  ;;  %v3997_v39 = vld [vmem:[#allocation10 + $0x64] ss:$12 sps:$4 sm:$0xff]   ;;  %v183_v41 = vld [vmem:[#allocation2 + $0x38] sm:$0xff]  ;;  %v197_v48 = vmul.f32 %v4607_v8, %v182_v40  ;;  %v4009_v55 = vld [vmem:[#allocation10 + $0x1c] ss:$12 sps:$4 sm:$0xff]   ;;  %vm3552_vm11 = vcmask 1047559  }
  0x81   :  { %v206_v15 = vadd.f32 %v4611_v12, %v191_v10  ;;  %v207_v16 = vadd.f32 %v4611_v12, %v192_v11  ;;  %328 = vmatprep.subr.bf16.mxu1 %v3982_v13  ;;  %v208_v28 = vadd.f32 %v4611_v12, %v193_v22  ;;  %v209_v29 = vadd.f32 %v4611_v12, %v194_v23  ;;  %v4001_v45 = vld [vmem:[#allocation10 + $0x4c] ss:$12 sps:$4 sm:$0xff]   ;;  %v3999_v46 = vld [vmem:[#allocation10 + $0x48] ss:$12 sps:$4 sm:$0xff]   ;;  %v4003_v51 = vld [vmem:[#allocation10 + $0x30] ss:$12 sps:$4 sm:$0xff]  }
  0x82   :  { %3882 = vmatpush3.bf16.msra.mxu0 %v3998_v25  ;;  %v210_v43 = vadd.f32 %v4611_v12, %v195_v37  ;;  %v211_v44 = vadd.f32 %v4611_v12, %v196_v38  ;;  %v198_v49 = vmul.f32 %v4607_v8, %v183_v41  ;;  %v4005_v50 = vld [vmem:[#allocation10 + $0x34] ss:$12 sps:$4 sm:$0xff]   ;;  %v212_v52 = vadd.f32 %v4611_v12, %v197_v48  ;;  %v4010_v56 = vld [vmem:[#allocation10 + $0x50] ss:$12 sps:$4 sm:$0xff]   ;;  %v4007_v57 = vld [vmem:[#allocation10 + $0x18] ss:$12 sps:$4 sm:$0xff]  }
  0x83   :  { %v257_v21 = vpack.c.bf16 %v207_v16, %v206_v15  ;;  %3883 = vmatprep.subr.bf16.mxu0 %v4002_v30  ;;  %v258_v36 = vpack.c.bf16 %v209_v29, %v208_v28  ;;  %v4013_v58 = vld [vmem:[#allocation10 + $0x4] ss:$12 sps:$4 sm:$0xff]   ;;  %v4011_v60 = vld [vmem:[#allocation10] ss:$12 sps:$4 sm:$0xff]   ;;  %v4016_v62 = vld [vmem:[#allocation10 + $0x8] ss:$12 sps:$4 sm:$0xff]  }
  0x84   :  { %329 = vmatpush1.bf16.msra.mxu1 %v3984_v14  ;;  %v259_v47 = vpack.c.bf16 %v211_v44, %v210_v43  ;;  %v213_v53 = vadd.f32 %v4611_v12, %v198_v49  ;;  %v4014_v59 = vld [vmem:[#allocation10 + $0x38] ss:$12 sps:$4 sm:$0xff]   ;;  %v4015_v61 = vld [vmem:[#allocation10 + $0x20] ss:$12 sps:$4 sm:$0xff]   ;;  %v3654_v63 = vld [vmem:[#allocation8] ss:$0 sm:$0xff] }
  0x85   :  { %541 = vmatprep.subr.bf16.mxu1 %v3987_v19  ;;  %v4018_v37 = vld [vmem:[#allocation11 + $0x30] sm:$0xff]   ;;  %v4019_v38 = vld [vmem:[#allocation11 + $0x28] sm:$0xff]   ;;  %v4021_v40 = vld [vmem:[#allocation11 + $0x18] sm:$0xff]  }
  0x86   :  { %3884 = vmatpush3.bf16.msra.mxu0 %v4002_v30  ;;  %v260_v54 = vpack.c.bf16 %v213_v53, %v212_v52  ;;  %v4022_v41 = vld [vmem:[#allocation11 + $0x10] sm:$0xff]   ;;  %v4024_v43 = vld [vmem:[#allocation11] sm:$0xff]   ;;  %v4035_v49 = vld [vmem:[#allocation13 + $0x7c] ss:$12 sps:$4 sm:$0xff]  }
  0x87   :  { %3650 = vmatmul.mubr.msk.bf16.vlgmr.msra.gmra.mxu1 %vm301_vm0, %v257_v21  ;;  %3885 = vmatprep.subr.bf16.mxu0 %v4006_v34  ;;  %v4025_v44 = vld [vmem:[#allocation13 + $0xa8] ss:$12 sps:$4 sm:$0xff]   ;;  %v4029_v48 = vld [vmem:[#allocation13 + $0x90] ss:$12 sps:$4 sm:$0xff]   ;;  %v4037_v52 = vld [vmem:[#allocation13 + $0x60] ss:$12 sps:$4 sm:$0xff]  }
  0x88   :  { %356 = vmatprep.mubr.bf16.mxu1 %v4480_v0  ;;  %542 = vmatpush1.bf16.msra.mxu1 %v3985_v24  ;;  %v4043_v53 = vld [vmem:[#allocation13 + $0x4c] ss:$12 sps:$4 sm:$0xff]  }
  0x89   :  { %543 = vmatprep.subr.bf16.mxu1 %v3990_v26 }
  0x8a   :  { %3886 = vmatpush3.bf16.msra.mxu0 %v4006_v34 }
  0x8b   :  { %3887 = vmatprep.subr.bf16.mxu0 %v4010_v56 }
  0x8c   :  { %544 = vmatpush1.bf16.msra.mxu1 %v3988_v32 }
  0x8d   :  { %545 = vmatprep.subr.bf16.mxu1 %v3993_v33 }
  0x8e   :  { %3888 = vmatpush3.bf16.msra.mxu0 %v4010_v56 }
  0x8f   :  { %3651 = vmatmul.mubr.msk.bf16.gmra.mxu1 %vm301_vm0, %v258_v36  ;;  %3889 = vmatprep.subr.bf16.mxu0 %v4014_v59  ;;  %v4017_v36 = vld [vmem:[#allocation11 + $0x38] sm:$0xff]  }
  0x90   :  { %366 = vmatprep.mubr.bf16.mxu1 %v4480_v0  ;;  %546 = vmatpush1.bf16.msra.mxu1 %v3991_v35 }
  0x91   :  { %547 = vmatprep.subr.bf16.mxu1 %v3997_v39  ;;  %v4020_v39 = vld [vmem:[#allocation11 + $0x20] sm:$0xff]  }
  0x92   :  { %3890 = vmatpush3.bf16.msra.mxu0 %v4014_v59 }
  0x93   :  { %3891 = vmatprep.subr.bf16.mxu0 %v4015_v61 }
  0x94   :  { %548 = vmatpush1.bf16.msra.mxu1 %v3995_v42  ;;  %v4023_v42 = vld [vmem:[#allocation11 + $0x8] sm:$0xff]  }
  0x95   :  { %549 = vmatprep.subr.bf16.mxu1 %v4001_v45  ;;  %v4027_v45 = vld [vmem:[#allocation13 + $0xac] ss:$12 sps:$4 sm:$0xff]  }
  0x96   :  { %3892 = vmatpush3.bf16.msra.mxu0 %v4015_v61 }
  0x97   :  { %3652 = vmatmul.mubr.msk.bf16.gmra.mxu1 %vm301_vm0, %v259_v47  ;;  %3893 = vmatprep.subr.bf16.mxu0 %v4016_v62  ;;  %v4031_v47 = vld [vmem:[#allocation13 + $0x94] ss:$12 sps:$4 sm:$0xff]  }
  0x98   :  { %376 = vmatprep.mubr.bf16.mxu1 %v4480_v0  ;;  %550 = vmatpush1.bf16.msra.mxu1 %v3999_v46  ;;  %v4653_v46 = vld [vmem:[#allocation13 + $0xb0] ss:$12 sps:$4 sm:$0xff]  }
  0x99   :  { %551 = vmatprep.subr.bf16.mxu1 %v4005_v50  ;;  %v4033_v50 = vld [vmem:[#allocation13 + $0x78] ss:$12 sps:$4 sm:$0xff]  }
  0x9a   :  { %3894 = vmatpush3.bf16.msra.mxu0 %v4016_v62  ;;  %v687_v62 = vlaneseq }
  0x9b   :  { %1155 = vmatprep.subr.bf16.mxu0 %v4027_v45 }
  0x9c   :  { %552 = vmatpush1.bf16.msra.mxu1 %v4003_v51  ;;  %v4039_v51 = vld [vmem:[#allocation13 + $0x64] ss:$12 sps:$4 sm:$0xff]  }
  0x9d   :  { %553 = vmatprep.subr.bf16.mxu1 %v4009_v55 }
  0x9f   :  { %3653 = vmatmul.mubr.msk.bf16.gmra.mxu1 %vm301_vm0, %v260_v54  ;;  %v4041_v54 = vld [vmem:[#allocation13 + $0x48] ss:$12 sps:$4 sm:$0xff]  }
  0xa0   :  { %573 = vmatprep.mubr.bf16.mxu1 %v4480_v0  ;;  %554 = vmatpush1.bf16.msra.mxu1 %v4007_v57 }
  0xa1   :  { %555 = vmatprep.subr.bf16.mxu1 %v4013_v58 }
  0xa4   :  { %556 = vmatpush1.bf16.msra.mxu1 %v4011_v60 }
  0xa5   :  { %3903 = vmatprep.subr.bf16.mxu1 %v4017_v36 }
 0x147   :  { %v348_v1 = vpop.f32.mrf.mxu1 }
 0x148   :  { %v393_v3 = vadd.f32 %v3654_v63, %v348_v1 }
 0x149   :  { %v4635_v2 = vpop.f32.mrf.mxu1 }
 0x14a   :  { %v401_v7 = vmax.f32 %v393_v3, 0.0 }
 0x14b   :  { %v352_v4 = vpop.f32.mrf.mxu1 }
 0x14c   :  { %v394_v5 = vadd.f32 %v3654_v63, %v352_v4 }
 0x14d   :  { %v4637_v6 = vpop.f32.mrf.mxu1 }
 0x14e   :  { %v402_v8 = vmax.f32 %v394_v5, 0.0  ;;  %v4664_v5 = vshrl.u32 %v687_v62, 7 }
 0x14f   :  { %v358_v9 = vpop.f32.mrf.mxu1 }
 0x150   :  { %v409_v10 = vpack.c.bf16 %v402_v8, %v401_v7  ;;  %v395_v12 = vadd.f32 %v3654_v63, %v358_v9  ;;  %vm689_vm1 = vcmp.lt.s32.totalorder %v4664_v5, 1  ;;  %vm749_vm2 = vcmp.lt.s32.totalorder %v4664_v5, 7 }
 0x151   :  { %v4639_v11 = vpop.f32.mrf.mxu1 }
 0x152   :  { %574 = vmatmul.mubr.bf16.vlgmr.msra.gmra.mxu1 %v409_v10  ;;  %3895 = vmatprep.mubr.bf16.mxu0 %v409_v10  ;;  %v403_v16 = vmax.f32 %v395_v12, 0.0 }
 0x153   :  { %v362_v13 = vpop.f32.mrf.mxu1  ;;  %583 = vmatprep.mubr.bf16.mxu1 %v4480_v0  ;;  %3904 = vmatpush3.bf16.msra.mxu1 %v4017_v36 }
 0x154   :  { %v396_v14 = vadd.f32 %v3654_v63, %v362_v13  ;;  %3905 = vmatprep.subr.bf16.mxu1 %v4018_v37  ;;  %v700_v13 = vadd.s32 24, %v4664_v5 }
 0x155   :  { %v4642_v15 = vpop.f32.mrf.mxu1 }
 0x156   :  { %v404_v17 = vmax.f32 %v396_v14, 0.0 }
 0x157   :  { %v368_v18 = vpop.f32.mrf.mxu1  ;;  %3906 = vmatpush3.bf16.msra.mxu1 %v4018_v37 }
 0x158   :  { %v410_v19 = vpack.c.bf16 %v404_v17, %v403_v16  ;;  %v397_v21 = vadd.f32 %v3654_v63, %v368_v18  ;;  %3907 = vmatprep.subr.bf16.mxu1 %v4019_v38  ;;  %v4672_v18 = vadd.s32 4294967295, %v4664_v5 }
 0x159   :  { %v4644_v20 = vpop.f32.mrf.mxu1 }
 0x15a   :  { %584 = vmatmul.mubr.bf16.gmra.mxu1 %v410_v19  ;;  %3896 = vmatmul.mubr.bf16.vlgmr.msra.gmra.mxu0 %v410_v19  ;;  %v405_v25 = vmax.f32 %v397_v21, 0.0  ;;  %vm705_vm3 = vcmp.ge.s32.totalorder %v4672_v18, 0 }
 0x15b   :  { %v372_v22 = vpop.f32.mrf.mxu1  ;;  %593 = vmatprep.mubr.bf16.mxu1 %v4480_v0  ;;  %3908 = vmatpush3.bf16.msra.mxu1 %v4019_v38 }
 0x15c   :  { %v398_v23 = vadd.f32 %v3654_v63, %v372_v22  ;;  %3909 = vmatprep.subr.bf16.mxu1 %v4020_v39  ;;  %1156 = vmatpush1.bf16.msra.mxu0 %v4025_v44 }
 0x15d   :  { %v4647_v24 = vpop.f32.mrf.mxu1  ;;  %1157 = vmatprep.subr.bf16.mxu0 %v4031_v47 }
 0x15e   :  { %v406_v26 = vmax.f32 %v398_v23, 0.0 }
 0x15f   :  { %v378_v27 = vpop.f32.mrf.mxu1  ;;  %3910 = vmatpush3.bf16.msra.mxu1 %v4020_v39 }
 0x160   :  { %v411_v28 = vpack.c.bf16 %v406_v26, %v405_v25  ;;  %v399_v30 = vadd.f32 %v3654_v63, %v378_v27  ;;  %3911 = vmatprep.subr.bf16.mxu1 %v4021_v40  ;;  %1158 = vmatpush1.bf16.msra.mxu0 %v4029_v48  ;;  %v4677_v27 = vadd.s32 1, %v700_v13 }
 0x161   :  { %v4649_v29 = vpop.f32.mrf.mxu1  ;;  %1159 = vmatprep.subr.bf16.mxu0 %v4035_v49 }
 0x162   :  { %594 = vmatmul.mubr.bf16.gmra.mxu1 %v411_v28  ;;  %3899 = vmatprep.mubr.bf16.mxu0 %v411_v28  ;;  %v407_v33 = vmax.f32 %v399_v30, 0.0  ;;  %5651 = vst [vmem:[#allocation24_spill] sm:$0xff] %v4677_v27  ;;  %vm769_vm4 = vcmp.lt.s32.totalorder %v4677_v27, 32 }
 0x163   :  { %v382_v31 = vpop.f32.mrf.mxu1  ;;  %603 = vmatprep.mubr.bf16.mxu1 %v4480_v0  ;;  %3912 = vmatpush3.bf16.msra.mxu1 %v4021_v40 }
 0x164   :  { %v400_v32 = vadd.f32 %v3654_v63, %v382_v31  ;;  %3913 = vmatprep.subr.bf16.mxu1 %v4022_v41  ;;  %1160 = vmatpush1.bf16.msra.mxu0 %v4033_v50 }
 0x165   :  { %1161 = vmatprep.subr.bf16.mxu0 %v4039_v51  ;;  %v4656_v55 = vpop.f32.mrf.mxu1 }
 0x166   :  { %v408_v34 = vmax.f32 %v400_v32, 0.0 }
 0x167   :  { %3914 = vmatpush3.bf16.msra.mxu1 %v4022_v41 }
 0x168   :  { %v412_v35 = vpack.c.bf16 %v408_v34, %v407_v33  ;;  %3915 = vmatprep.subr.bf16.mxu1 %v4023_v42  ;;  %1162 = vmatpush1.bf16.msra.mxu0 %v4037_v52 }
 0x169   :  { %1163 = vmatprep.subr.bf16.mxu0 %v4043_v53  ;;  %v3679_v53 = vld [vmem:[%s5614_s6] ss:$0 sm:$0xff] }
 0x16a   :  { %604 = vmatmul.mubr.bf16.gmra.mxu1 %v412_v35  ;;  %3900 = vmatmul.mubr.bf16.gmra.mxu0 %v412_v35  ;;  %v4686_v35 = vld [vmem:[%s5615_s7] ss:$0 sm:$0xff] }
 0x16b   :  { %1187 = vmatprep.mubr.bf16.mxu0 %v4480_v0  ;;  %3916 = vmatpush3.bf16.msra.mxu1 %v4023_v42  ;;  %v826_v48 = vadd.f32 %v4686_v35, %v4635_v2 }
 0x16c   :  { %3917 = vmatprep.subr.bf16.mxu1 %v4024_v43  ;;  %1164 = vmatpush1.bf16.msra.mxu0 %v4041_v54 }
 0x16f   :  { %3918 = vmatpush3.bf16.msra.mxu1 %v4024_v43 }
 0x170   :  { %3927 = vmatprep.subr.bf16.mxu1 %v4653_v46 }
 0x212   :  { %v4658_v56 = vpop.f32.mrf.mxu1 }
 0x213   :  { %v679_v14 = vrot.slane %v4658_v56, 7 }
 0x214   :  { %v4660_v57 = vpop.f32.mrf.mxu1 }
 0x216   :  { %v579_v58 = vpop.f32.mrf.mxu1 }
 0x217   :  { %v680_v10 = vrot.slane %v579_v58, 7 }
 0x218   :  { %v581_v59 = vpop.f32.mrf.mxu1 }
 0x219   :  { %v696_v21 = vsel %vm689_vm1, %v679_v14, %v680_v10 }
 0x21a   :  { %v585_v60 = vpop.f32.mrf.mxu1  ;;  %v3897_v61 = vpop.f32.mrf.mxu0  ;;  %v734_v32 = vadd.f32 %v696_v21, %v581_v59 }
 0x21b   :  { %v681_v16 = vrot.slane %v585_v60, 7  ;;  %v743_v22 = vrot.slane %v3897_v61, 1 }
 0x21c   :  { %v587_v63 = vpop.f32.mrf.mxu1  ;;  %v4662_v1 = vpop.f32.mrf.mxu0 }
 0x21d   :  { %v695_v28 = vsel %vm689_vm1, %v680_v10, %v681_v16  ;;  %v741_v43 = vrot.slane %v4662_v1, 1 }
 0x21e   :  { %v589_v3 = vpop.f32.mrf.mxu1  ;;  %v3898_v4 = vpop.f32.mrf.mxu0  ;;  %v735_v38 = vadd.f32 %v695_v28, %v587_v63 }
 0x21f   :  { %v682_v23 = vrot.slane %v589_v3, 7  ;;  %v744_v25 = vrot.slane %v3898_v4, 1 }
 0x220   :  { %v591_v7 = vpop.f32.mrf.mxu1  ;;  %v651_v8 = vpop.f32.mrf.mxu0 }
 0x221   :  { %v742_v17 = vrot.slane %v651_v8, 1  ;;  %v754_v36 = vsel %vm749_vm2, %v743_v22, %v744_v25  ;;  %v694_v37 = vsel %vm689_vm1, %v681_v16, %v682_v23 }
 0x222   :  { %v595_v9 = vpop.f32.mrf.mxu1  ;;  %v792_v49 = vadd.f32 %v754_v36, %v735_v38  ;;  %v736_v50 = vadd.f32 %v694_v37, %v591_v7  ;;  %v827_v38 = vadd.f32 %v4686_v35, %v4637_v6 }
 0x223   :  { %v755_v30 = vsel %vm749_vm2, %v742_v17, %v743_v22  ;;  %v683_v31 = vrot.slane %v595_v9, 7  ;;  %v756_v54 = vsel %vm749_vm2, %v741_v43, %v742_v17 }
 0x224   :  { %v4667_v12 = vpop.f32.mrf.mxu1  ;;  %v791_v39 = vadd.f32 %v755_v30, %v734_v32 }
 0x225   :  { %v693_v44 = vsel %vm689_vm1, %v682_v23, %v683_v31  ;;  %v806_v23 = vadd.f32 %v3679_v53, %v792_v49 }
 0x226   :  { %v599_v19 = vpop.f32.mrf.mxu1  ;;  %v805_v60 = vadd.f32 %v3679_v53, %v791_v39  ;;  %v729_v2 = vsel %vm705_vm3, %v693_v44, 0.0  ;;  %v828_v44 = vadd.f32 %v4686_v35, %v4639_v11 }
 0x227   :  { %v684_v40 = vrot.slane %v599_v19, 7 }
 0x228   :  { %v601_v26 = vpop.f32.mrf.mxu1  ;;  %v813_v39 = vmax.f32 %v805_v60, 0.0 }
 0x229   :  { %v692_v61 = vsel %vm689_vm1, %v683_v31, %v684_v40 }
 0x22a   :  { %v605_v33 = vpop.f32.mrf.mxu1  ;;  %v3901_v34 = vpop.f32.mrf.mxu0 }
 0x22b   :  { %v685_v45 = vrot.slane %v605_v33, 7  ;;  %v747_v9 = vrot.slane %v3901_v34, 1 }
 0x22c   :  { %v607_v41 = vpop.f32.mrf.mxu1  ;;  %v664_v42 = vpop.f32.mrf.mxu0 }
 0x22d   :  { %v745_v47 = vrot.slane %v664_v42, 1  ;;  %v691_v3 = vsel %vm689_vm1, %v684_v40, %v685_v45  ;;  %v814_v40 = vmax.f32 %v806_v23, 0.0 }
 0x22e   :  { %v609_v51 = vpop.f32.mrf.mxu1  ;;  %v3902_v52 = vpop.f32.mrf.mxu0  ;;  %v739_v28 = vadd.f32 %v691_v3, %v607_v41 }
 0x22f   :  { %v753_v56 = vsel %vm749_vm2, %v744_v25, %v745_v47  ;;  %v686_v58 = vrot.slane %v609_v51, 7  ;;  %v748_v59 = vrot.slane %v3902_v52, 1  ;;  %v738_v25 = vadd.f32 %v692_v61, %v601_v26 }
 0x230   :  { %v785_v62 = vsel %vm769_vm4, %v753_v56, 0.0  ;;  %v611_v63 = vpop.f32.mrf.mxu1  ;;  %v667_v1 = vpop.f32.mrf.mxu0  ;;  %v4748_v56 = vadd.f32 %v828_v44, %v814_v40  ;;  %v833_v61 = vadd.f32 %v4686_v35, %v4656_v55  ;;  %v4040_v55 = vld [vmem:[#allocation13 + $0x68] ss:$12 sps:$4 sm:$0xff]  }
 0x231   :  { %v793_v4 = vadd.f32 %v785_v62, %v736_v50  ;;  %v697_v7 = vsel %vm689_vm1, %v686_v58, %v679_v14  ;;  %v690_v8 = vsel %vm689_vm1, %v685_v45, %v686_v58  ;;  %v757_v16 = vsel %vm749_vm2, %v748_v59, %v741_v43 }
 0x232   :  { %v725_v10 = vsel %vm705_vm3, %v697_v7, 0.0  ;;  %v740_v13 = vadd.f32 %v690_v8, %v611_v63  ;;  %v789_v21 = vsel %vm769_vm4, %v757_v16, 0.0  ;;  %v746_v22 = vrot.slane %v667_v1, 1  ;;  %v4036_v1 = vld [vmem:[#allocation13 + $0x80] ss:$12 sps:$4 sm:$0xff]  }
 0x233   :  { %v807_v17 = vadd.f32 %v3679_v53, %v793_v4  ;;  %v733_v19 = vadd.f32 %v725_v10, %v4660_v57  ;;  %v737_v14 = vadd.f32 %v729_v2, %v4667_v12  ;;  %v750_v31 = vsel %vm749_vm2, %v747_v9, %v748_v59  ;;  %v4032_v2 = vld [vmem:[#allocation13 + $0x98] ss:$12 sps:$4 sm:$0xff]   ;;  %v4044_v7 = vld [vmem:[#allocation13 + $0x50] ss:$12 sps:$4 sm:$0xff]   ;;  %v4052_v10 = vld [vmem:[#allocation13 + $0x20] ss:$12 sps:$4 sm:$0xff]  }
 0x234   :  { %v751_v32 = vsel %vm749_vm2, %v746_v22, %v747_v9  ;;  %v752_v33 = vsel %vm749_vm2, %v745_v47, %v746_v22  ;;  %v797_v34 = vadd.f32 %v789_v21, %v740_v13  ;;  %v829_v12 = vadd.f32 %v4686_v35, %v4642_v15  ;;  %v4051_v8 = vld [vmem:[#allocation13 + $0x1c] ss:$12 sps:$4 sm:$0xff]   ;;  %v4049_v9 = vld [vmem:[#allocation13 + $0x18] ss:$12 sps:$4 sm:$0xff]   ;;  %v4053_v16 = vld [vmem:[#allocation13] ss:$12 sps:$4 sm:$0xff]  }
 0x235   :  { %v790_v30 = vadd.f32 %v756_v54, %v733_v19  ;;  %v815_v57 = vmax.f32 %v807_v17, 0.0  ;;  %v794_v36 = vadd.f32 %v752_v33, %v737_v14  ;;  %v795_v37 = vadd.f32 %v751_v32, %v738_v25  ;;  %v4055_v13 = vld [vmem:[#allocation13 + $0x4] ss:$12 sps:$4 sm:$0xff]   ;;  %v4056_v17 = vld [vmem:[#allocation13 + $0x8] ss:$12 sps:$4 sm:$0xff]  }
 0x236   :  { %v796_v41 = vadd.f32 %v750_v31, %v739_v28  ;;  %v830_v45 = vadd.f32 %v4686_v35, %v4644_v20  ;;  %v831_v47 = vadd.f32 %v4686_v35, %v4647_v24  ;;  %v811_v50 = vadd.f32 %v3679_v53, %v797_v34  ;;  %v3681_v22 = vld [vmem:[%s5617_s9] ss:$0 sm:$0xff] }
 0x237   :  { %v804_v26 = vadd.f32 %v3679_v53, %v790_v30  ;;  %v808_v42 = vadd.f32 %v3679_v53, %v794_v36  ;;  %v809_v43 = vadd.f32 %v3679_v53, %v795_v37  ;;  %v4742_v6 = vadd.f32 %v829_v12, %v815_v57 }
 0x238   :  { %v4746_v54 = vadd.f32 %v827_v38, %v813_v39  ;;  %v810_v58 = vadd.f32 %v3679_v53, %v796_v41  ;;  %v819_v24 = vmax.f32 %v811_v50, 0.0  ;;  %v832_v62 = vadd.f32 %v4686_v35, %v4649_v29  ;;  %v4047_v29 = vld [vmem:[#allocation13 + $0x34] ss:$12 sps:$4 sm:$0xff]   ;;  %v4048_v35 = vld [vmem:[#allocation13 + $0x38] ss:$12 sps:$4 sm:$0xff]  }
 0x239   :  { %v812_v49 = vmax.f32 %v804_v26, 0.0  ;;  %v816_v15 = vmax.f32 %v808_v42, 0.0  ;;  %v817_v51 = vmax.f32 %v809_v43, 0.0  ;;  %v893_v60 = vpack.c.bf16 %v4742_v6, %v4748_v56  ;;  %1165 = vmatprep.subr.bf16.mxu0 %v4047_v29  ;;  %v4075_v29 = vld [vmem:[#allocation14 + $0x80] ss:$16 sps:$4 sm:$0xff]  }
 0x23a   :  { %v818_v53 = vmax.f32 %v810_v58, 0.0  ;;  %v4765_v63 = vadd.f32 %v833_v61, %v819_v24  ;;  %v4062_v58 = vld [vmem:[#allocation14 + $0xec] ss:$16 sps:$4 sm:$0xff]   ;;  %v4060_v24 = vld [vmem:[#allocation14 + $0xe8] ss:$16 sps:$4 sm:$0xff]  }
 0x23b   :  { %v4744_v52 = vadd.f32 %v826_v48, %v812_v49  ;;  %v4750_v11 = vadd.f32 %v830_v45, %v816_v15  ;;  %v4752_v59 = vadd.f32 %v831_v47, %v817_v51  ;;  %v4059_v51 = vld [vmem:[#allocation14 + $0xe4] ss:$16 sps:$4 sm:$0xff]   ;;  %v4066_v61 = vld [vmem:[#allocation14 + $0xc8] ss:$16 sps:$4 sm:$0xff]  }
 0x23c   :  { %v4767_v3 = vadd.f32 %v832_v62, %v818_v53  ;;  %v4071_v53 = vld [vmem:[#allocation14 + $0xa4] ss:$16 sps:$4 sm:$0xff]   ;;  %v4074_v62 = vld [vmem:[#allocation14 + $0xac] ss:$16 sps:$4 sm:$0xff]  }
 0x23d   :  { %v892_v20 = vpack.c.bf16 %v4746_v54, %v4744_v52  ;;  %v894_v48 = vpack.c.bf16 %v4752_v59, %v4750_v11 }
 0x23e   :  { %v895_v4 = vpack.c.bf16 %v4765_v63, %v4767_v3 }
 0x23f   :  { %3919 = vmatprep.mubr.bf16.mxu1 %v892_v20  ;;  %v4057_v20 = vld [vmem:[#allocation14 + $0xe0] ss:$16 sps:$4 sm:$0xff]  }
 0x240   :  { %3920 = vmatmul.mubr.bf16.vlgmr.msra.gmra.mxu1 %v893_v60  ;;  %v4065_v60 = vld [vmem:[#allocation14 + $0xc4] ss:$16 sps:$4 sm:$0xff]  }
 0x241   :  { %3923 = vmatprep.mubr.bf16.mxu1 %v894_v48  ;;  %3928 = vmatpush3.bf16.msra.mxu1 %v4653_v46  ;;  %v4045_v46 = vld [vmem:[#allocation13 + $0x30] ss:$12 sps:$4 sm:$0xff]  }
 0x242   :  { %3929 = vmatprep.subr.bf16.mxu1 %v4032_v2  ;;  %1166 = vmatpush1.bf16.msra.mxu0 %v4045_v46  ;;  %v4063_v48 = vld [vmem:[#allocation14 + $0xc0] ss:$16 sps:$4 sm:$0xff]   ;;  %v4078_v46 = vld [vmem:[#allocation14 + $0x88] ss:$16 sps:$4 sm:$0xff]  }
 0x243   :  { %1167 = vmatprep.subr.bf16.mxu0 %v4051_v8  ;;  %v4086_v8 = vld [vmem:[#allocation14 + $0x6c] ss:$16 sps:$4 sm:$0xff]  }
 0x245   :  { %3930 = vmatpush3.bf16.msra.mxu1 %v4032_v2  ;;  %v4068_v2 = vld [vmem:[#allocation14 + $0xcc] ss:$16 sps:$4 sm:$0xff]  }
 0x246   :  { %3931 = vmatprep.subr.bf16.mxu1 %v4036_v1  ;;  %1168 = vmatpush1.bf16.msra.mxu0 %v4049_v9  ;;  %v4081_v9 = vld [vmem:[#allocation14 + $0x60] ss:$16 sps:$4 sm:$0xff]  }
 0x247   :  { %1169 = vmatprep.subr.bf16.mxu0 %v4055_v13  ;;  %v4089_v13 = vld [vmem:[#allocation14 + $0x44] ss:$16 sps:$4 sm:$0xff]  }
 0x248   :  { %3924 = vmatmul.mubr.bf16.gmra.mxu1 %v895_v4  ;;  %v4072_v4 = vld [vmem:[#allocation14 + $0xa8] ss:$16 sps:$4 sm:$0xff]  }
 0x249   :  { %3932 = vmatpush3.bf16.msra.mxu1 %v4036_v1  ;;  %v4069_v1 = vld [vmem:[#allocation14 + $0xa0] ss:$16 sps:$4 sm:$0xff]  }
 0x24a   :  { %3933 = vmatprep.subr.bf16.mxu1 %v4040_v55  ;;  %1170 = vmatpush1.bf16.msra.mxu0 %v4053_v16  ;;  %v4092_v16 = vld [vmem:[#allocation14 + $0x4c] ss:$16 sps:$4 sm:$0xff]  }
 0x24b   :  { %1682 = vmatprep.subr.bf16.mxu0 %v4059_v51 }
 0x24d   :  { %3934 = vmatpush3.bf16.msra.mxu1 %v4040_v55  ;;  %v4077_v55 = vld [vmem:[#allocation14 + $0x84] ss:$16 sps:$4 sm:$0xff]  }
 0x24e   :  { %3935 = vmatprep.subr.bf16.mxu1 %v4044_v7 }
 0x251   :  { %3936 = vmatpush3.bf16.msra.mxu1 %v4044_v7  ;;  %v4080_v7 = vld [vmem:[#allocation14 + $0x8c] ss:$16 sps:$4 sm:$0xff]  }
 0x252   :  { %3937 = vmatprep.subr.bf16.mxu1 %v4048_v35 }
 0x255   :  { %3938 = vmatpush3.bf16.msra.mxu1 %v4048_v35  ;;  %v4083_v35 = vld [vmem:[#allocation14 + $0x64] ss:$16 sps:$4 sm:$0xff]  }
 0x256   :  { %3939 = vmatprep.subr.bf16.mxu1 %v4052_v10 }
 0x259   :  { %3940 = vmatpush3.bf16.msra.mxu1 %v4052_v10  ;;  %v4084_v10 = vld [vmem:[#allocation14 + $0x68] ss:$16 sps:$4 sm:$0xff]  }
 0x25a   :  { %3941 = vmatprep.subr.bf16.mxu1 %v4056_v17 }
 0x25d   :  { %3942 = vmatpush3.bf16.msra.mxu1 %v4056_v17  ;;  %v4087_v17 = vld [vmem:[#allocation14 + $0x40] ss:$16 sps:$4 sm:$0xff]  }
 0x25e   :  { %1755 = vmatprep.subr.bf16.mxu1 %v4062_v58 }
 0x300   :  { %v3921_v19 = vpop.f32.mrf.mxu1 }
 0x301   :  { %v993_v28 = vadd.f32 %v3921_v19, %v3681_v22  ;;  %v4090_v19 = vld [vmem:[#allocation14 + $0x48] ss:$16 sps:$4 sm:$0xff]  }
 0x302   :  { %v984_v21 = vpop.f32.mrf.mxu1 }
 0x303   :  { %v985_v14 = vadd.f32 %v3681_v22, %v984_v21  ;;  %v1017_v36 = vmax.f32 %v993_v28, 0.0  ;;  %v4095_v21 = vld [vmem:[#allocation14 + $0x24] ss:$16 sps:$4 sm:$0xff]  }
 0x304   :  { %v3922_v23 = vpop.f32.mrf.mxu1  ;;  %v4101_v28 = vld [vmem:[#allocation14 + $0x4] ss:$16 sps:$4 sm:$0xff]  }
 0x305   :  { %v996_v25 = vadd.f32 %v3922_v23, %v3681_v22  ;;  %v1015_v57 = vmax.f32 %v985_v14, 0.0  ;;  %v4093_v23 = vld [vmem:[#allocation14 + $0x20] ss:$16 sps:$4 sm:$0xff]   ;;  %v4096_v14 = vld [vmem:[#allocation14 + $0x28] ss:$16 sps:$4 sm:$0xff]  }
 0x306   :  { %v987_v30 = vpop.f32.mrf.mxu1 }
 0x307   :  { %v988_v31 = vadd.f32 %v3681_v22, %v987_v30  ;;  %v1018_v32 = vmax.f32 %v996_v25, 0.0  ;;  %v4099_v25 = vld [vmem:[#allocation14] ss:$16 sps:$4 sm:$0xff]   ;;  %v4102_v30 = vld [vmem:[#allocation14 + $0x8] ss:$16 sps:$4 sm:$0xff]  }
 0x308   :  { %v3925_v33 = vpop.f32.mrf.mxu1 }
 0x309   :  { %v1016_v34 = vmax.f32 %v988_v31, 0.0  ;;  %v1024_v12 = vpack.c.bf16 %v1018_v32, %v1017_v36  ;;  %v1009_v41 = vadd.f32 %v3925_v33, %v3681_v22  ;;  %v4104_v31 = vld [vmem:[#allocation14 + $0xc] ss:$16 sps:$4 sm:$0xff]  }
 0x30a   :  { %v1000_v37 = vpop.f32.mrf.mxu1  ;;  %v4107_v32 = vld [vmem:[#allocation16 + $0x154] ss:$24 sps:$4 sm:$0xff]  }
 0x30b   :  { %v1023_v38 = vpack.c.bf16 %v1016_v34, %v1015_v57  ;;  %v1001_v39 = vadd.f32 %v3681_v22, %v1000_v37  ;;  %v1021_v49 = vmax.f32 %v1009_v41, 0.0  ;;  %v4110_v33 = vld [vmem:[#allocation16 + $0x15c] ss:$24 sps:$4 sm:$0xff]  }
 0x30c   :  { %v3926_v26 = vpop.f32.mrf.mxu1 }
 0x30d   :  { %v1012_v40 = vadd.f32 %v3926_v26, %v3681_v22  ;;  %1188 = vmatmul.mubr.bf16.vlgmr.msra.gmra.mxu0 %v1023_v38  ;;  %3943 = vmatprep.mubr.bf16.mxu1 %v1023_v38  ;;  %v1019_v45 = vmax.f32 %v1001_v39, 0.0 }
 0x30e   :  { %v1003_v42 = vpop.f32.mrf.mxu1  ;;  %3944 = vmatmul.mubr.bf16.vlgmr.msra.gmra.mxu1 %v1024_v12  ;;  %1197 = vmatprep.mubr.bf16.mxu0 %v4480_v0 }
 0x30f   :  { %v1004_v43 = vadd.f32 %v3681_v22, %v1003_v42  ;;  %v1022_v44 = vmax.f32 %v1012_v40, 0.0  ;;  %1683 = vmatpush1.bf16.msra.mxu0 %v4057_v20  ;;  %1756 = vmatpush1.bf16.msra.mxu1 %v4060_v24  ;;  %v4098_v22 = vld [vmem:[#allocation14 + $0x2c] ss:$16 sps:$4 sm:$0xff]  }
 0x310   :  { %1684 = vmatprep.subr.bf16.mxu0 %v4065_v60  ;;  %1757 = vmatprep.subr.bf16.mxu1 %v4068_v2 }
 0x311   :  { %v1020_v47 = vmax.f32 %v1004_v43, 0.0  ;;  %v1026_v15 = vpack.c.bf16 %v1022_v44, %v1021_v49 }
 0x313   :  { %v1025_v50 = vpack.c.bf16 %v1020_v47, %v1019_v45  ;;  %1685 = vmatpush1.bf16.msra.mxu0 %v4063_v48  ;;  %1758 = vmatpush1.bf16.msra.mxu1 %v4066_v61 }
 0x314   :  { %1686 = vmatprep.subr.bf16.mxu0 %v4071_v53  ;;  %1759 = vmatprep.subr.bf16.mxu1 %v4074_v62 }
 0x315   :  { %1198 = vmatmul.mubr.bf16.gmra.mxu0 %v1024_v12  ;;  %3947 = vmatprep.mubr.bf16.mxu1 %v1025_v50 }
 0x316   :  { %3948 = vmatmul.mubr.bf16.gmra.mxu1 %v1026_v15  ;;  %1207 = vmatprep.mubr.bf16.mxu0 %v4480_v0 }
 0x317   :  { %1787 = vmatprep.mubr.bf16.mxu1 %v4480_v0  ;;  %1687 = vmatpush1.bf16.msra.mxu0 %v4069_v1 }
 0x318   :  { %1760 = vmatpush1.bf16.msra.mxu1 %v4072_v4  ;;  %1688 = vmatprep.subr.bf16.mxu0 %v4077_v55 }
 0x319   :  { %1761 = vmatprep.subr.bf16.mxu1 %v4080_v7 }
 0x31b   :  { %1689 = vmatpush1.bf16.msra.mxu0 %v4075_v29 }
 0x31c   :  { %1762 = vmatpush1.bf16.msra.mxu1 %v4078_v46  ;;  %1690 = vmatprep.subr.bf16.mxu0 %v4083_v35 }
 0x31d   :  { %1208 = vmatmul.mubr.bf16.gmra.mxu0 %v1025_v50  ;;  %1763 = vmatprep.subr.bf16.mxu1 %v4086_v8  ;;  %v4798_v8 = vld [vmem:[%s5619_s11] ss:$0 sm:$0xff] }
 0x31e   :  { %1217 = vmatprep.mubr.bf16.mxu0 %v4480_v0 }
 0x31f   :  { %1691 = vmatpush1.bf16.msra.mxu0 %v4081_v9 }
 0x320   :  { %1764 = vmatpush1.bf16.msra.mxu1 %v4084_v10  ;;  %1692 = vmatprep.subr.bf16.mxu0 %v4089_v13 }
 0x321   :  { %1765 = vmatprep.subr.bf16.mxu1 %v4092_v16 }
 0x323   :  { %1693 = vmatpush1.bf16.msra.mxu0 %v4087_v17 }
 0x324   :  { %1766 = vmatpush1.bf16.msra.mxu1 %v4090_v19  ;;  %1694 = vmatprep.subr.bf16.mxu0 %v4095_v21 }
 0x325   :  { %1218 = vmatmul.mubr.bf16.gmra.mxu0 %v1026_v15  ;;  %1767 = vmatprep.subr.bf16.mxu1 %v4098_v22 }
 0x326   :  { %1714 = vmatprep.mubr.bf16.mxu0 %v4480_v0 }
 0x327   :  { %1695 = vmatpush1.bf16.msra.mxu0 %v4093_v23 }
 0x328   :  { %1768 = vmatpush1.bf16.msra.mxu1 %v4096_v14  ;;  %1696 = vmatprep.subr.bf16.mxu0 %v4101_v28 }
 0x329   :  { %1769 = vmatprep.subr.bf16.mxu1 %v4104_v31 }
 0x32b   :  { %1697 = vmatpush1.bf16.msra.mxu0 %v4099_v25 }
 0x32c   :  { %1770 = vmatpush1.bf16.msra.mxu1 %v4102_v30  ;;  %2359 = vmatprep.subr.bf16.mxu0 %v4107_v32 }
 0x32d   :  { %2432 = vmatprep.subr.bf16.mxu1 %v4110_v33 }
 0x3cd   :  { %v1189_v57 = vpop.f32.mrf.mxu0 }
 0x3ce   :  { %v3945_v36 = vpop.f32.mrf.mxu1  ;;  %v1293_v49 = vrot.slane %v1189_v57, 7 }
 0x3cf   :  { %v1191_v34 = vpop.f32.mrf.mxu0  ;;  %v1327_v24 = vrot.slane %v3945_v36, 1 }
 0x3d0   :  { %v4779_v12 = vpop.f32.mrf.mxu1 }
 0x3d1   :  { %v1193_v37 = vpop.f32.mrf.mxu0  ;;  %v1325_v21 = vrot.slane %v4779_v12, 1 }
 0x3d2   :  { %v3946_v40 = vpop.f32.mrf.mxu1  ;;  %v1294_v45 = vrot.slane %v1193_v37, 7 }
 0x3d3   :  { %v1195_v38 = vpop.f32.mrf.mxu0  ;;  %v1328_v29 = vrot.slane %v3946_v40, 1 }
 0x3d4   :  { %v1265_v43 = vpop.f32.mrf.mxu1  ;;  %v1307_v51 = vsel %vm689_vm1, %v1293_v49, %v1294_v45 }
 0x3d5   :  { %v1199_v26 = vpop.f32.mrf.mxu0  ;;  %v1326_v58 = vrot.slane %v1265_v43, 1  ;;  %v1318_v61 = vadd.f32 %v1307_v51, %v1195_v38  ;;  %v1337_v37 = vsel %vm749_vm2, %v1327_v24, %v1328_v29 }
 0x3d6   :  { %v4781_v50 = vpop.f32.mrf.mxu1  ;;  %v1295_v62 = vrot.slane %v1199_v26, 7 }
 0x3d7   :  { %v1201_v39 = vpop.f32.mrf.mxu0  ;;  %v1338_v53 = vsel %vm749_vm2, %v1326_v58, %v1327_v24  ;;  %v1339_v30 = vsel %vm749_vm2, %v1325_v21, %v1326_v58 }
 0x3d8   :  { %v1278_v60 = vpop.f32.mrf.mxu1  ;;  %v1350_v46 = vadd.f32 %v1338_v53, %v1318_v61  ;;  %v1306_v9 = vsel %vm689_vm1, %v1294_v45, %v1295_v62  ;;  %v4105_v53 = vld [vmem:[#allocation16 + $0x150] ss:$24 sps:$4 sm:$0xff]  }
 0x3d9   :  { %v1203_v41 = vpop.f32.mrf.mxu0  ;;  %v1329_v4 = vrot.slane %v1278_v60, 1  ;;  %v1319_v25 = vadd.f32 %v1306_v9, %v1201_v39 }
 0x3da   :  { %v1296_v2 = vrot.slane %v1203_v41, 7  ;;  %v4802_v10 = vpop.f32.mrf.mxu1  ;;  %v1364_v14 = vadd.f32 %v4798_v8, %v1350_v46 }
 0x3db   :  { %v1205_v42 = vpop.f32.mrf.mxu0  ;;  %v1336_v16 = vsel %vm749_vm2, %v1328_v29, %v1329_v4  ;;  %v1332_v58 = vrot.slane %v4802_v10, 1  ;;  %v4111_v10 = vld [vmem:[#allocation16 + $0x120] ss:$24 sps:$4 sm:$0xff]  }
 0x3dc   :  { %v1305_v55 = vsel %vm689_vm1, %v1295_v62, %v1296_v2  ;;  %v1344_v31 = vsel %vm769_vm4, %v1336_v16, 0.0  ;;  %v1281_v33 = vpop.f32.mrf.mxu1  ;;  %v1372_v12 = vmax.f32 %v1364_v14, 0.0  ;;  %v4108_v62 = vld [vmem:[#allocation16 + $0x158] ss:$24 sps:$4 sm:$0xff]   ;;  %v4119_v16 = vld [vmem:[#allocation16 + $0xf4] ss:$24 sps:$4 sm:$0xff]  }
 0x3dd   :  { %v1209_v44 = vpop.f32.mrf.mxu0  ;;  %v1320_v13 = vadd.f32 %v1305_v55, %v1205_v42  ;;  %v1330_v39 = vrot.slane %v1281_v33, 1  ;;  %v4116_v55 = vld [vmem:[#allocation16 + $0x12c] ss:$24 sps:$4 sm:$0xff]   ;;  %v1340_v46 = vsel %vm749_vm2, %v1332_v58, %v1325_v21 }
 0x3de   :  { %v1297_v17 = vrot.slane %v1209_v44, 7  ;;  %v1331_v44 = vrot.slane %v4781_v50, 1  ;;  %v1380_v45 = vadd.f32 %v1372_v12, %v4746_v54  ;;  %v4128_v33 = vld [vmem:[#allocation16 + $0xcc] ss:$24 sps:$4 sm:$0xff]  }
 0x3df   :  { %v1211_v47 = vpop.f32.mrf.mxu0  ;;  %v1352_v32 = vadd.f32 %v1344_v31, %v1320_v13  ;;  %v1335_v54 = vsel %vm749_vm2, %v1329_v4, %v1330_v39  ;;  %v4114_v13 = vld [vmem:[#allocation16 + $0x128] ss:$24 sps:$4 sm:$0xff]   ;;  %v4131_v12 = vld [vmem:[#allocation16 + $0x94] ss:$24 sps:$4 sm:$0xff]  }
 0x3e0   :  { %v1304_v57 = vsel %vm689_vm1, %v1296_v2, %v1297_v17  ;;  %v1334_v24 = vsel %vm749_vm2, %v1330_v39, %v1331_v44  ;;  %v1333_v31 = vsel %vm749_vm2, %v1331_v44, %v1332_v58  ;;  %v4140_v44 = vld [vmem:[#allocation16 + $0x6c] ss:$24 sps:$4 sm:$0xff]  }
 0x3e1   :  { %v4783_v15 = vpop.f32.mrf.mxu0  ;;  %v1313_v40 = vsel %vm705_vm3, %v1304_v57, 0.0  ;;  %v1366_v41 = vadd.f32 %v4798_v8, %v1352_v32  ;;  %v4125_v32 = vld [vmem:[#allocation16 + $0xc4] ss:$24 sps:$4 sm:$0xff]  }
 0x3e2   :  { %v1298_v22 = vrot.slane %v4783_v15, 7  ;;  %v1321_v15 = vadd.f32 %v1313_v40, %v1211_v47 }
 0x3e3   :  { %v1215_v20 = vpop.f32.mrf.mxu0  ;;  %v1374_v2 = vmax.f32 %v1366_v41, 0.0 }
 0x3e4   :  { %v1303_v38 = vsel %vm689_vm1, %v1297_v17, %v1298_v22  ;;  %v1353_v29 = vadd.f32 %v1335_v54, %v1321_v15  ;;  %v4122_v17 = vld [vmem:[#allocation16 + $0xfc] ss:$24 sps:$4 sm:$0xff]   ;;  %v4156_v54 = vld [vmem:[#allocation16 + $0x2d8] ss:$24 sps:$4 sm:$0xff]  }
 0x3e5   :  { %v4787_v48 = vpop.f32.mrf.mxu0  ;;  %v1322_v42 = vadd.f32 %v1303_v38, %v1215_v20  ;;  %v4126_v38 = vld [vmem:[#allocation16 + $0xc8] ss:$24 sps:$4 sm:$0xff]   ;;  %v4143_v15 = vld [vmem:[#allocation16 + $0x34] ss:$24 sps:$4 sm:$0xff]  }
 0x3e6   :  { %v1299_v60 = vrot.slane %v4787_v48, 7 }
 0x3e7   :  { %v4791_v1 = vpop.f32.mrf.mxu0  ;;  %v1354_v61 = vadd.f32 %v1334_v24, %v1322_v42  ;;  %v4129_v42 = vld [vmem:[#allocation16 + $0x90] ss:$24 sps:$4 sm:$0xff]  }
 0x3e8   :  { %v1302_v48 = vsel %vm689_vm1, %v1298_v22, %v1299_v60 }
 0x3e9   :  { %v1223_v7 = vpop.f32.mrf.mxu0  ;;  %v1368_v4 = vadd.f32 %v4798_v8, %v1354_v61  ;;  %v1323_v21 = vadd.f32 %v1302_v48, %v4791_v1  ;;  %v4152_v61 = vld [vmem:[#allocation16 + $0xc] ss:$24 sps:$4 sm:$0xff]   ;;  %v4165_v48 = vld [vmem:[#allocation16 + $0x270] ss:$24 sps:$4 sm:$0xff]  }
 0x3ea   :  { %v1300_v35 = vrot.slane %v1223_v7, 7 }
 0x3eb   :  { %v1225_v50 = vpop.f32.mrf.mxu0  ;;  %v1376_v14 = vmax.f32 %v1368_v4, 0.0  ;;  %v1355_v57 = vadd.f32 %v1333_v31, %v1323_v21  ;;  %v4173_v4 = vld [vmem:[#allocation16 + $0x244] ss:$24 sps:$4 sm:$0xff]  }
 0x3ec   :  { %v1308_v19 = vsel %vm689_vm1, %v1300_v35, %v1293_v49  ;;  %v1301_v47 = vsel %vm689_vm1, %v1299_v60, %v1300_v35  ;;  %v1382_v35 = vadd.f32 %v1374_v2, %v4742_v6  ;;  %v4141_v60 = vld [vmem:[#allocation16 + $0x30] ss:$24 sps:$4 sm:$0xff]   ;;  %v4185_v21 = vld [vmem:[#allocation16 + $0x1e4] ss:$24 sps:$4 sm:$0xff]  }
 0x3ed   :  { %v1309_v23 = vsel %vm705_vm3, %v1308_v19, 0.0  ;;  %v1324_v9 = vadd.f32 %v1301_v47, %v1225_v50  ;;  %v1367_v19 = vadd.f32 %v4798_v8, %v1353_v29  ;;  %v4144_v2 = vld [vmem:[#allocation16 + $0x38] ss:$24 sps:$4 sm:$0xff]   ;;  %v4161_v50 = vld [vmem:[#allocation16 + $0x2a4] ss:$24 sps:$4 sm:$0xff]  }
 0x3ee   :  { %v1317_v28 = vadd.f32 %v1309_v23, %v1191_v34  ;;  %v1351_v34 = vadd.f32 %v1337_v37, %v1319_v25  ;;  %v1348_v23 = vsel %vm769_vm4, %v1340_v46, 0.0  ;;  %v4123_v37 = vld [vmem:[#allocation16 + $0xc0] ss:$24 sps:$4 sm:$0xff]   ;;  %v4164_v47 = vld [vmem:[#allocation16 + $0x2ac] ss:$24 sps:$4 sm:$0xff]  }
 0x3ef   :  { %v1356_v25 = vadd.f32 %v1348_v23, %v1324_v9  ;;  %v1375_v1 = vmax.f32 %v1367_v19, 0.0  ;;  %v4170_v29 = vld [vmem:[#allocation16 + $0x27c] ss:$24 sps:$4 sm:$0xff]   ;;  %v4168_v46 = vld [vmem:[#allocation16 + $0x278] ss:$24 sps:$4 sm:$0xff]  }
 0x3f0   :  { %v1349_v36 = vadd.f32 %v1339_v30, %v1317_v28  ;;  %v1365_v49 = vadd.f32 %v4798_v8, %v1351_v34  ;;  %v4117_v28 = vld [vmem:[#allocation16 + $0xf0] ss:$24 sps:$4 sm:$0xff]   ;;  %v4134_v34 = vld [vmem:[#allocation16 + $0x9c] ss:$24 sps:$4 sm:$0xff]   ;;  %v4176_v9 = vld [vmem:[#allocation16 + $0x24c] ss:$24 sps:$4 sm:$0xff]  }
 0x3f1   :  { %v4120_v30 = vld [vmem:[#allocation16 + $0xf8] ss:$24 sps:$4 sm:$0xff]   ;;  %v1383_v39 = vadd.f32 %v1375_v1, %v4750_v11  ;;  %v4188_v23 = vld [vmem:[#allocation16 + $0x1ec] ss:$24 sps:$4 sm:$0xff]   ;;  %v4198_v1 = vld [vmem:[#allocation16 + $0x188] ss:$24 sps:$4 sm:$0xff]  }
 0x3f2   :  { %v1363_v26 = vadd.f32 %v4798_v8, %v1349_v36  ;;  %v1373_v7 = vmax.f32 %v1365_v49, 0.0  ;;  %v1384_v36 = vadd.f32 %v1376_v14, %v4752_v59  ;;  %v4137_v59 = vld [vmem:[#allocation16 + $0x64] ss:$24 sps:$4 sm:$0xff]   ;;  %v4135_v11 = vld [vmem:[#allocation16 + $0x60] ss:$24 sps:$4 sm:$0xff]  }
 0x3f3   :  { %v4138_v49 = vld [vmem:[#allocation16 + $0x68] ss:$24 sps:$4 sm:$0xff]   ;;  %v4180_v19 = vld [vmem:[#allocation16 + $0x218] ss:$24 sps:$4 sm:$0xff]   ;;  %v4197_v31 = vld [vmem:[#allocation16 + $0x184] ss:$24 sps:$4 sm:$0xff]  }
 0x3f4   :  { %v1371_v43 = vmax.f32 %v1363_v26, 0.0  ;;  %v1381_v22 = vadd.f32 %v1373_v7, %v4748_v56  ;;  %v1370_v56 = vadd.f32 %v4798_v8, %v1356_v25  ;;  %v1369_v26 = vadd.f32 %v4798_v8, %v1355_v57  ;;  %v4167_v7 = vld [vmem:[#allocation16 + $0x274] ss:$24 sps:$4 sm:$0xff]   ;;  %v4186_v14 = vld [vmem:[#allocation16 + $0x1e8] ss:$24 sps:$4 sm:$0xff]  }
 0x3f5   :  { %v1520_v41 = vpack.c.bf16 %v1384_v36, %v1383_v39  ;;  %v4191_v25 = vld [vmem:[#allocation16 + $0x1b4] ss:$24 sps:$4 sm:$0xff]   ;;  %v4203_v57 = vld [vmem:[#allocation16 + $0x164] ss:$24 sps:$4 sm:$0xff]  }
 0x3f6   :  { %v1379_v51 = vadd.f32 %v1371_v43, %v4744_v52  ;;  %v4113_v52 = vld [vmem:[#allocation16 + $0x124] ss:$24 sps:$4 sm:$0xff]   ;;  %v1519_v6 = vpack.c.bf16 %v1382_v35, %v1381_v22  ;;  %v1378_v40 = vmax.f32 %v1370_v56, 0.0  ;;  %v4132_v43 = vld [vmem:[#allocation16 + $0x98] ss:$24 sps:$4 sm:$0xff]   ;;  %v4865_v56 = vsub.s32 0, %v4664_v5 }
 0x3f7   :  { %v4171_v35 = vld [vmem:[#allocation16 + $0x240] ss:$24 sps:$4 sm:$0xff]   ;;  %v1419_v36 = vld [vmem:[%s5621_s13] sm:$0x3] }
 0x3f8   :  { %v1518_v20 = vpack.c.bf16 %v1380_v45, %v1379_v51  ;;  %v1377_v45 = vmax.f32 %v1369_v26, 0.0  ;;  %v1386_v8 = vadd.f32 %v1378_v40, %v4765_v63  ;;  %v4146_v51 = vld [vmem:[#allocation16 + $0x3c] ss:$24 sps:$4 sm:$0xff]   ;;  %v4147_v63 = vld [vmem:[#allocation16] ss:$24 sps:$4 sm:$0xff]   ;;  %v4881_v40 = vrot.slane %v1419_v36, %v4865_v56 }
 0x3f9   :  { %v4183_v22 = vld [vmem:[#allocation16 + $0x1e0] ss:$24 sps:$4 sm:$0xff]  }
 0x3fa   :  { %1715 = vmatmul.mubr.bf16.vlgmr.msra.gmra.mxu0 %v1518_v20  ;;  %1788 = vmatmul.mubr.bf16.vlgmr.msra.gmra.mxu1 %v1518_v20  ;;  %v1385_v58 = vadd.f32 %v1377_v45, %v4767_v3  ;;  %v4150_v20 = vld [vmem:[#allocation16 + $0x8] ss:$24 sps:$4 sm:$0xff]  }
 0x3fb   :  { %1724 = vmatprep.mubr.bf16.mxu0 %v4480_v0  ;;  %1797 = vmatprep.mubr.bf16.mxu1 %v4480_v0  ;;  %v4153_v3 = vld [vmem:[#allocation16 + $0x2d0] ss:$24 sps:$4 sm:$0xff]  }
 0x3fc   :  { %2360 = vmatpush1.bf16.msra.mxu0 %v4105_v53  ;;  %2433 = vmatpush1.bf16.msra.mxu1 %v4108_v62  ;;  %v1521_v24 = vpack.c.bf16 %v1386_v8, %v1385_v58  ;;  %v4155_v53 = vld [vmem:[#allocation16 + $0x2d4] ss:$24 sps:$4 sm:$0xff]  }
 0x3fd   :  { %2361 = vmatprep.subr.bf16.mxu0 %v4113_v52  ;;  %2434 = vmatprep.subr.bf16.mxu1 %v4116_v55  ;;  %v4158_v62 = vld [vmem:[#allocation16 + $0x2dc] ss:$24 sps:$4 sm:$0xff]   ;;  %v4159_v52 = vld [vmem:[#allocation16 + $0x2a0] ss:$24 sps:$4 sm:$0xff]  }
 0x3fe   :  { %v4162_v55 = vld [vmem:[#allocation16 + $0x2a8] ss:$24 sps:$4 sm:$0xff]  }
 0x400   :  { %2362 = vmatpush1.bf16.msra.mxu0 %v4111_v10  ;;  %2435 = vmatpush1.bf16.msra.mxu1 %v4114_v13  ;;  %v4174_v10 = vld [vmem:[#allocation16 + $0x248] ss:$24 sps:$4 sm:$0xff]   ;;  %v4179_v13 = vld [vmem:[#allocation16 + $0x214] ss:$24 sps:$4 sm:$0xff]  }
 0x401   :  { %2363 = vmatprep.subr.bf16.mxu0 %v4119_v16  ;;  %2436 = vmatprep.subr.bf16.mxu1 %v4122_v17  ;;  %v4182_v16 = vld [vmem:[#allocation16 + $0x21c] ss:$24 sps:$4 sm:$0xff]   ;;  %v4177_v17 = vld [vmem:[#allocation16 + $0x210] ss:$24 sps:$4 sm:$0xff]  }
 0x402   :  { %1725 = vmatmul.mubr.bf16.gmra.mxu0 %v1519_v6  ;;  %1798 = vmatmul.mubr.bf16.gmra.mxu1 %v1519_v6  ;;  %v4189_v6 = vld [vmem:[#allocation16 + $0x1b0] ss:$24 sps:$4 sm:$0xff]  }
 0x403   :  { %1734 = vmatprep.mubr.bf16.mxu0 %v4480_v0  ;;  %1807 = vmatprep.mubr.bf16.mxu1 %v4480_v0 }
 0x404   :  { %2364 = vmatpush1.bf16.msra.mxu0 %v4117_v28  ;;  %2437 = vmatpush1.bf16.msra.mxu1 %v4120_v30  ;;  %v4194_v28 = vld [vmem:[#allocation16 + $0x1bc] ss:$24 sps:$4 sm:$0xff]   ;;  %v4192_v30 = vld [vmem:[#allocation16 + $0x1b8] ss:$24 sps:$4 sm:$0xff]  }
 0x405   :  { %2365 = vmatprep.subr.bf16.mxu0 %v4125_v32  ;;  %2438 = vmatprep.subr.bf16.mxu1 %v4128_v33  ;;  %v4195_v32 = vld [vmem:[#allocation16 + $0x180] ss:$24 sps:$4 sm:$0xff]   ;;  %v4200_v33 = vld [vmem:[#allocation16 + $0x18c] ss:$24 sps:$4 sm:$0xff]  }
 0x408   :  { %2366 = vmatpush1.bf16.msra.mxu0 %v4123_v37  ;;  %2439 = vmatpush1.bf16.msra.mxu1 %v4126_v38 }
 0x409   :  { %2367 = vmatprep.subr.bf16.mxu0 %v4131_v12  ;;  %2440 = vmatprep.subr.bf16.mxu1 %v4134_v34  ;;  %v4873_v12 = vsub.s32 1, %v4664_v5 }
 0x40a   :  { %1735 = vmatmul.mubr.bf16.gmra.mxu0 %v1520_v41  ;;  %1808 = vmatmul.mubr.bf16.gmra.mxu1 %v1520_v41 }
 0x40b   :  { %1744 = vmatprep.mubr.bf16.mxu0 %v4480_v0  ;;  %1817 = vmatprep.mubr.bf16.mxu1 %v4480_v0  ;;  %v4149_v0 = vld [vmem:[#allocation16 + $0x4] ss:$24 sps:$4 sm:$0xff]   ;;  %v4876_v26 = vrot.slane %v1419_v36, %v4873_v12 }
 0x40c   :  { %2368 = vmatpush1.bf16.msra.mxu0 %v4129_v42  ;;  %2441 = vmatpush1.bf16.msra.mxu1 %v4132_v43 }
 0x40d   :  { %2369 = vmatprep.subr.bf16.mxu0 %v4137_v59  ;;  %2442 = vmatprep.subr.bf16.mxu1 %v4140_v44 }
 0x410   :  { %2370 = vmatpush1.bf16.msra.mxu0 %v4135_v11  ;;  %2443 = vmatpush1.bf16.msra.mxu1 %v4138_v49 }
 0x411   :  { %2371 = vmatprep.subr.bf16.mxu0 %v4143_v15  ;;  %2444 = vmatprep.subr.bf16.mxu1 %v4146_v51 }
 0x412   :  { %1745 = vmatmul.mubr.bf16.gmra.mxu0 %v1521_v24  ;;  %1818 = vmatmul.mubr.bf16.gmra.mxu1 %v1521_v24 }
 0x414   :  { %2372 = vmatpush1.bf16.msra.mxu0 %v4141_v60  ;;  %2445 = vmatpush1.bf16.msra.mxu1 %v4144_v2 }
 0x415   :  { %2373 = vmatprep.subr.bf16.mxu0 %v4149_v0  ;;  %2446 = vmatprep.subr.bf16.mxu1 %v4152_v61 }
 0x418   :  { %2374 = vmatpush1.bf16.msra.mxu0 %v4147_v63  ;;  %2447 = vmatpush1.bf16.msra.mxu1 %v4150_v20 }
 0x419   :  { %2375 = vmatprep.subr.bf16.mxu0 %v4155_v53  ;;  %2448 = vmatprep.subr.bf16.mxu1 %v4158_v62  ;;  %v4201_v53 = vld [vmem:[#allocation16 + $0x160] ss:$24 sps:$4 sm:$0xff]  }
 0x41c   :  { %2376 = vmatpush2.bf16.msra.mxu0 %v4153_v3  ;;  %2449 = vmatpush2.bf16.msra.mxu1 %v4156_v54  ;;  %v4206_v3 = vld [vmem:[#allocation16 + $0x134] ss:$24 sps:$4 sm:$0xff]  }
 0x41d   :  { %2377 = vmatprep.subr.bf16.mxu0 %v4161_v50  ;;  %2450 = vmatprep.subr.bf16.mxu1 %v4164_v47 }
 0x420   :  { %2378 = vmatpush2.bf16.msra.mxu0 %v4159_v52  ;;  %2451 = vmatpush2.bf16.msra.mxu1 %v4162_v55 }
 0x421   :  { %2379 = vmatprep.subr.bf16.mxu0 %v4167_v7  ;;  %2452 = vmatprep.subr.bf16.mxu1 %v4170_v29 }
 0x424   :  { %2380 = vmatpush2.bf16.msra.mxu0 %v4165_v48  ;;  %2453 = vmatpush2.bf16.msra.mxu1 %v4168_v46  ;;  %v4204_v46 = vld [vmem:[#allocation16 + $0x130] ss:$24 sps:$4 sm:$0xff]  }
 0x425   :  { %2381 = vmatprep.subr.bf16.mxu0 %v4173_v4  ;;  %2454 = vmatprep.subr.bf16.mxu1 %v4176_v9  ;;  %v4209_v9 = vld [vmem:[#allocation16 + $0x104] ss:$24 sps:$4 sm:$0xff]  }
 0x428   :  { %2382 = vmatpush2.bf16.msra.mxu0 %v4171_v35  ;;  %2455 = vmatpush2.bf16.msra.mxu1 %v4174_v10 }
 0x429   :  { %2383 = vmatprep.subr.bf16.mxu0 %v4179_v13  ;;  %2456 = vmatprep.subr.bf16.mxu1 %v4182_v16 }
 0x42c   :  { %2384 = vmatpush2.bf16.msra.mxu0 %v4177_v17  ;;  %2457 = vmatpush2.bf16.msra.mxu1 %v4180_v19 }
 0x42d   :  { %2385 = vmatprep.subr.bf16.mxu0 %v4185_v21  ;;  %2458 = vmatprep.subr.bf16.mxu1 %v4188_v23  ;;  %v4207_v23 = vld [vmem:[#allocation16 + $0x100] ss:$24 sps:$4 sm:$0xff]  }
 0x430   :  { %2386 = vmatpush2.bf16.msra.mxu0 %v4183_v22  ;;  %2459 = vmatpush2.bf16.msra.mxu1 %v4186_v14 }
 0x431   :  { %2387 = vmatprep.subr.bf16.mxu0 %v4191_v25  ;;  %2460 = vmatprep.subr.bf16.mxu1 %v4194_v28  ;;  %v4212_v25 = vld [vmem:[#allocation16 + $0xd4] ss:$24 sps:$4 sm:$0xff]  }
 0x434   :  { %2388 = vmatpush2.bf16.msra.mxu0 %v4189_v6  ;;  %2461 = vmatpush2.bf16.msra.mxu1 %v4192_v30 }
 0x435   :  { %2389 = vmatprep.subr.bf16.mxu0 %v4197_v31  ;;  %2462 = vmatprep.subr.bf16.mxu1 %v4200_v33  ;;  %v4481_v33 = vmov 1983009808  }
 0x438   :  { %2390 = vmatpush2.bf16.msra.mxu0 %v4195_v32  ;;  %2463 = vmatpush2.bf16.msra.mxu1 %v4198_v1  ;;  %v2752_v1 = vunpack.c.l.s4 %v4481_v33  ;;  %v4225_v33 = vld [vmem:[#allocation16 + $0x2e0] ss:$24 sps:$4 sm:$0xff]  }
 0x439   :  { %2505 = vmatprep.subr.bf16.mxu0 %v4203_v57 }
 0x4ba   :  { %v1716_v37 = vpop.f32.mrf.mxu0  ;;  %v4870_v38 = vpop.f32.mrf.mxu1 }
 0x4bb   :  { %v1839_v8 = vadd.f32 %v4881_v40, %v1716_v37 }
 0x4bc   :  { %v1718_v34 = vpop.f32.mrf.mxu0  ;;  %v4878_v39 = vpop.f32.mrf.mxu1 }
 0x4bd   :  { %v1840_v59 = vadd.f32 %v4876_v26, %v1718_v34  ;;  %v1855_v0 = vmax.f32 %v1839_v8, 0.0  ;;  %v4210_v34 = vld [vmem:[#allocation16 + $0xd0] ss:$24 sps:$4 sm:$0xff]  }
 0x4be   :  { %v1720_v41 = vpop.f32.mrf.mxu0  ;;  %v4883_v42 = vpop.f32.mrf.mxu1 }
 0x4bf   :  { %v1841_v43 = vadd.f32 %v4881_v40, %v1720_v41  ;;  %v1856_v58 = vmax.f32 %v1840_v59, 0.0 }
 0x4c0   :  { %v1722_v44 = vpop.f32.mrf.mxu0  ;;  %v4887_v45 = vpop.f32.mrf.mxu1 }
 0x4c1   :  { %v1842_v11 = vadd.f32 %v4876_v26, %v1722_v44  ;;  %v1857_v51 = vmax.f32 %v1841_v43, 0.0  ;;  %v4215_v43 = vld [vmem:[#allocation16 + $0xa4] ss:$24 sps:$4 sm:$0xff]  }
 0x4c2   :  { %v1726_v49 = vpop.f32.mrf.mxu0  ;;  %v4891_v15 = vpop.f32.mrf.mxu1 }
 0x4c3   :  { %v1858_v24 = vmax.f32 %v1842_v11, 0.0  ;;  %v4899_v62 = vpack.c.bf16 %v1857_v51, %v1855_v0  ;;  %v1843_v55 = vadd.f32 %v4881_v40, %v1726_v49 }
 0x4c4   :  { %v1728_v60 = vpop.f32.mrf.mxu0  ;;  %v4893_v2 = vpop.f32.mrf.mxu1 }
 0x4c5   :  { %v4895_v61 = vpack.c.bf16 %v1858_v24, %v1856_v58  ;;  %v1844_v54 = vadd.f32 %v4876_v26, %v1728_v60  ;;  %v1859_v17 = vmax.f32 %v1843_v55, 0.0  ;;  %v2753_v24 = vunpack.c.0.s8 %v2752_v1  ;;  %v4230_v1 = vld [vmem:[#allocation16 + $0x2b4] ss:$24 sps:$4 sm:$0xff]  }
 0x4c6   :  { %v1730_v63 = vpop.f32.mrf.mxu0  ;;  %v4897_v20 = vpop.f32.mrf.mxu1 }
 0x4c7   :  { %v1845_v50 = vadd.f32 %v4881_v40, %v1730_v63  ;;  %2391 = vmatprep.mubr.bf16.mxu0 %v4895_v61  ;;  %2464 = vmatprep.mubr.bf16.mxu1 %v4895_v61  ;;  %v1860_v35 = vmax.f32 %v1844_v54, 0.0  ;;  %v4218_v54 = vld [vmem:[#allocation16 + $0x74] ss:$24 sps:$4 sm:$0xff]  }
 0x4c8   :  { %v1732_v47 = vpop.f32.mrf.mxu0  ;;  %v4905_v52 = vpop.f32.mrf.mxu1  ;;  %2392 = vmatmul.mubr.bf16.vlgmr.msra.gmra.mxu0 %v4899_v62  ;;  %2465 = vmatmul.mubr.bf16.vlgmr.msra.gmra.mxu1 %v4899_v62 }
 0x4c9   :  { %v1846_v7 = vadd.f32 %v4876_v26, %v1732_v47  ;;  %2506 = vmatpush1.bf16.msra.mxu0 %v4201_v53  ;;  %v1861_v4 = vmax.f32 %v1845_v50, 0.0  ;;  %v4213_v53 = vld [vmem:[#allocation16 + $0xa0] ss:$24 sps:$4 sm:$0xff]  }
 0x4ca   :  { %v1736_v29 = vpop.f32.mrf.mxu0  ;;  %v4911_v48 = vpop.f32.mrf.mxu1  ;;  %2507 = vmatprep.subr.bf16.mxu0 %v4206_v3 }
 0x4cb   :  { %v1862_v10 = vmax.f32 %v1846_v7, 0.0  ;;  %v4919_v14 = vpack.c.bf16 %v1861_v4, %v1859_v17  ;;  %v1847_v32 = vadd.f32 %v4881_v40, %v1736_v29 }
 0x4cc   :  { %v1738_v13 = vpop.f32.mrf.mxu0  ;;  %v4913_v16 = vpop.f32.mrf.mxu1 }
 0x4cd   :  { %v4915_v19 = vpack.c.bf16 %v1862_v10, %v1860_v35  ;;  %2508 = vmatpush1.bf16.msra.mxu0 %v4204_v46  ;;  %v1848_v6 = vadd.f32 %v4876_v26, %v1738_v13  ;;  %v1863_v49 = vmax.f32 %v1847_v32, 0.0  ;;  %v4954_v46 = vsub.s32 %v2753_v24, %v4664_v5  ;;  %v4216_v35 = vld [vmem:[#allocation16 + $0x70] ss:$24 sps:$4 sm:$0xff]   ;;  %v4221_v13 = vld [vmem:[#allocation16 + $0x44] ss:$24 sps:$4 sm:$0xff]  }
 0x4ce   :  { %v1740_v21 = vpop.f32.mrf.mxu0  ;;  %v4917_v22 = vpop.f32.mrf.mxu1  ;;  %2509 = vmatprep.subr.bf16.mxu0 %v4209_v9  ;;  %v4227_v32 = vld [vmem:[#allocation16 + $0x2e4] ss:$24 sps:$4 sm:$0xff]   ;;  %v4243_v24 = vld [vmem:[#allocation16 + $0x1c0] ss:$24 sps:$4 sm:$0xff]  }
 0x4cf   :  { %v1849_v28 = vadd.f32 %v4881_v40, %v1740_v21  ;;  %2401 = vmatprep.mubr.bf16.mxu0 %v4915_v19  ;;  %2474 = vmatprep.mubr.bf16.mxu1 %v4915_v19  ;;  %v1864_v59 = vmax.f32 %v1848_v6, 0.0  ;;  %v4219_v6 = vld [vmem:[#allocation16 + $0x40] ss:$24 sps:$4 sm:$0xff]  }
 0x4d0   :  { %v1742_v30 = vpop.f32.mrf.mxu0  ;;  %v4925_v31 = vpop.f32.mrf.mxu1  ;;  %2402 = vmatmul.mubr.bf16.gmra.mxu0 %v4919_v14  ;;  %2475 = vmatmul.mubr.bf16.gmra.mxu1 %v4919_v14 }
 0x4d1   :  { %v1850_v57 = vadd.f32 %v4876_v26, %v1742_v30  ;;  %2510 = vmatpush1.bf16.msra.mxu0 %v4207_v23  ;;  %v1865_v41 = vmax.f32 %v1849_v28, 0.0  ;;  %v4224_v28 = vld [vmem:[#allocation16 + $0x14] ss:$24 sps:$4 sm:$0xff]   ;;  %v4222_v30 = vld [vmem:[#allocation16 + $0x10] ss:$24 sps:$4 sm:$0xff]  }
 0x4d2   :  { %v1746_v36 = vpop.f32.mrf.mxu0  ;;  %v4931_v37 = vpop.f32.mrf.mxu1  ;;  %2511 = vmatprep.subr.bf16.mxu0 %v4212_v25 }
 0x4d3   :  { %v1866_v44 = vmax.f32 %v1850_v57, 0.0  ;;  %v4943_v3 = vpack.c.bf16 %v1865_v41, %v1863_v49  ;;  %v1851_v29 = vadd.f32 %v4881_v40, %v1746_v36  ;;  %v4228_v57 = vld [vmem:[#allocation16 + $0x2b0] ss:$24 sps:$4 sm:$0xff]   ;;  %v4233_v36 = vld [vmem:[#allocation16 + $0x284] ss:$24 sps:$4 sm:$0xff]  }
 0x4d4   :  { %v1748_v8 = vpop.f32.mrf.mxu0  ;;  %v4933_v11 = vpop.f32.mrf.mxu1  ;;  %v4236_v41 = vld [vmem:[#allocation16 + $0x254] ss:$24 sps:$4 sm:$0xff]   ;;  %v4245_v49 = vld [vmem:[#allocation16 + $0x1c4] ss:$24 sps:$4 sm:$0xff]  }
 0x4d5   :  { %v4939_v60 = vpack.c.bf16 %v1866_v44, %v1864_v59  ;;  %2512 = vmatpush1.bf16.msra.mxu0 %v4210_v34  ;;  %v1852_v50 = vadd.f32 %v4876_v26, %v1748_v8  ;;  %v1867_v23 = vmax.f32 %v1851_v29, 0.0  ;;  %v4231_v34 = vld [vmem:[#allocation16 + $0x280] ss:$24 sps:$4 sm:$0xff]   ;;  %v4239_v59 = vld [vmem:[#allocation16 + $0x224] ss:$24 sps:$4 sm:$0xff]  }
 0x4d6   :  { %v1750_v0 = vpop.f32.mrf.mxu0  ;;  %v4941_v63 = vpop.f32.mrf.mxu1  ;;  %2513 = vmatprep.subr.bf16.mxu0 %v4215_v43  ;;  %v4234_v43 = vld [vmem:[#allocation16 + $0x250] ss:$24 sps:$4 sm:$0xff]   ;;  %v4242_v44 = vld [vmem:[#allocation16 + $0x1f4] ss:$24 sps:$4 sm:$0xff]  }
 0x4d7   :  { %v1853_v47 = vadd.f32 %v4881_v40, %v1750_v0  ;;  %2411 = vmatprep.mubr.bf16.mxu0 %v4939_v60  ;;  %2484 = vmatprep.mubr.bf16.mxu1 %v4939_v60  ;;  %v1868_v17 = vmax.f32 %v1852_v50, 0.0  ;;  %v4240_v8 = vld [vmem:[#allocation16 + $0x1f0] ss:$24 sps:$4 sm:$0xff]   ;;  %v4248_v0 = vld [vmem:[#allocation16 + $0x194] ss:$24 sps:$4 sm:$0xff]  }
 0x4d8   :  { %v1752_v55 = vpop.f32.mrf.mxu0  ;;  %v4949_v7 = vpop.f32.mrf.mxu1  ;;  %2412 = vmatmul.mubr.bf16.gmra.mxu0 %v4943_v3  ;;  %2485 = vmatmul.mubr.bf16.gmra.mxu1 %v4943_v3 }
 0x4d9   :  { %v1854_v4 = vadd.f32 %v4876_v26, %v1752_v55  ;;  %v3100_v9 = vcombine.high %v4941_v63, %v4949_v7  ;;  %2514 = vmatpush1.bf16.msra.mxu0 %v4213_v53  ;;  %v1869_v10 = vmax.f32 %v1853_v47, 0.0  ;;  %v4246_v53 = vld [vmem:[#allocation16 + $0x190] ss:$24 sps:$4 sm:$0xff]  }
 0x4da   :  { %2515 = vmatprep.subr.bf16.mxu0 %v4218_v54 }
 0x4db   :  { %v1870_v21 = vmax.f32 %v1854_v4, 0.0  ;;  %v4961_v40 = vrot.slane %v3100_v9, %v4954_v46  ;;  %v1877_v26 = vpack.c.bf16 %v1869_v10, %v1867_v23 }
 0x4dd   :  { %5652 = vst [vmem:[#allocation25_spill] sm:$0xff] %v4961_v40  ;;  %v1878_v25 = vpack.c.bf16 %v1870_v21, %v1868_v17  ;;  %2516 = vmatpush1.bf16.msra.mxu0 %v4216_v35 }
 0x4de   :  { %2517 = vmatprep.subr.bf16.mxu0 %v4221_v13 }
 0x4df   :  { %2421 = vmatprep.mubr.bf16.mxu0 %v1878_v25  ;;  %2494 = vmatprep.mubr.bf16.mxu1 %v1878_v25 }
 0x4e0   :  { %2422 = vmatmul.mubr.bf16.gmra.mxu0 %v1877_v26  ;;  %2495 = vmatmul.mubr.bf16.gmra.mxu1 %v1877_v26 }
 0x4e1   :  { %2518 = vmatpush1.bf16.msra.mxu0 %v4219_v6  ;;  %2537 = vmatprep.mubr.bf16.mxu0 %v4895_v61  ;;  %v4237_v61 = vld [vmem:[#allocation16 + $0x220] ss:$24 sps:$4 sm:$0xff]  }
 0x4e2   :  { %2519 = vmatprep.subr.bf16.mxu0 %v4224_v28  ;;  %v2973_v28 = vcombine.low %v4870_v38, %v4878_v39 }
 0x4e5   :  { %2520 = vmatpush1.bf16.msra.mxu0 %v4222_v30  ;;  %v2974_v30 = vcombine.high %v4870_v38, %v4878_v39  ;;  %v3009_v38 = vcombine.low %v4891_v15, %v4893_v2  ;;  %v3010_v39 = vcombine.high %v4891_v15, %v4893_v2 }
 0x4e6   :  { %2521 = vmatprep.subr.bf16.mxu0 %v4227_v32  ;;  %v2991_v32 = vcombine.low %v4883_v42, %v4887_v45 }
 0x4e9   :  { %2522 = vmatpush2.bf16.msra.mxu0 %v4225_v33  ;;  %v2992_v33 = vcombine.high %v4883_v42, %v4887_v45  ;;  %v5032_v42 = vsub.s32 2, %v4664_v5  ;;  %v2988_v45 = vrot.slane %v2974_v30, %v4954_v46 }
 0x4ea   :  { %2523 = vmatprep.subr.bf16.mxu0 %v4230_v1 }
 0x4eb   :  { %5654 = vst [vmem:[#allocation27_spill] sm:$0xff] %v5032_v42 }
 0x4ed   :  { %2524 = vmatpush2.bf16.msra.mxu0 %v4228_v57 }
 0x4ee   :  { %2525 = vmatprep.subr.bf16.mxu0 %v4233_v36 }
 0x4f1   :  { %2526 = vmatpush2.bf16.msra.mxu0 %v4231_v34 }
 0x4f2   :  { %2527 = vmatprep.subr.bf16.mxu0 %v4236_v41  ;;  %v2981_v41 = vrot.slane %v2973_v28, %v4954_v46  ;;  %v3064_v28 = vcombine.high %v4917_v22, %v4925_v31 }
 0x4f5   :  { %2528 = vmatpush2.bf16.msra.mxu0 %v4234_v43  ;;  %v3027_v43 = vcombine.low %v4897_v20, %v4905_v52 }
 0x4f6   :  { %2529 = vmatprep.subr.bf16.mxu0 %v4239_v59  ;;  %v2999_v59 = vrot.slane %v2991_v32, %v4954_v46 }
 0x4f9   :  { %2530 = vmatpush2.bf16.msra.mxu0 %v4237_v61  ;;  %v3006_v61 = vrot.slane %v2992_v33, %v4954_v46 }
 0x4fa   :  { %2531 = vmatprep.subr.bf16.mxu0 %v4242_v44 }
 0x4fd   :  { %2532 = vmatpush2.bf16.msra.mxu0 %v4240_v8  ;;  %v3028_v8 = vcombine.high %v4897_v20, %v4905_v52  ;;  %v3024_v20 = vrot.slane %v3010_v39, %v4954_v46  ;;  %v3063_v52 = vcombine.low %v4917_v22, %v4925_v31 }
 0x4fe   :  { %2533 = vmatprep.subr.bf16.mxu0 %v4245_v49 }
 0x4ff   :  { %v3042_v32 = vrot.slane %v3028_v8, %v4954_v46  ;;  %v3026_v40 = vcombine.high %v3024_v20, %v3024_v20  ;;  %v3071_v8 = vrot.slane %v3063_v52, %v4954_v46 }
 0x501   :  { %2534 = vmatpush2.bf16.msra.mxu0 %v4243_v24  ;;  %v3045_v24 = vcombine.low %v4911_v48, %v4913_v16 }
 0x502   :  { %2535 = vmatprep.subr.bf16.mxu0 %v4248_v0  ;;  %v3046_v0 = vcombine.high %v4911_v48, %v4913_v16  ;;  %v3007_v48 = vcombine.high %v2999_v59, %v2999_v59  ;;  %v3008_v16 = vcombine.high %v3006_v61, %v3006_v61 }
 0x504   :  { %v3060_v58 = vrot.slane %v3046_v0, %v4954_v46 }
 0x505   :  { %2536 = vmatpush2.bf16.msra.mxu0 %v4246_v53 }
 0x508   :  { %2538 = vmatmul.mubr.bf16.vlgmr.msra.gmra.mxu0 %v4899_v62 }
 0x509   :  { %2547 = vmatprep.mubr.bf16.mxu0 %v4915_v19 }
 0x510   :  { %2548 = vmatmul.mubr.bf16.gmra.mxu0 %v4919_v14 }
 0x511   :  { %2557 = vmatprep.mubr.bf16.mxu0 %v4939_v60 }
 0x518   :  { %2558 = vmatmul.mubr.bf16.gmra.mxu0 %v4943_v3  ;;  %v1517_v3 = vld [vmem:[%s5624_s16] sm:$0x3] }
 0x519   :  { %2567 = vmatprep.mubr.bf16.mxu0 %v1878_v25  ;;  %v3153_v9 = vrot.slane %v1517_v3, %v4865_v56  ;;  %v3157_v35 = vrot.slane %v1517_v3, %v4873_v12  ;;  %v2989_v3 = vcombine.high %v2981_v41, %v2981_v41 }
 0x51b   :  { %v3158_v17 = vcombine.low %v3153_v9, %v3157_v35  ;;  %v3159_v23 = vcombine.high %v3153_v9, %v3157_v35  ;;  %v3017_v9 = vrot.slane %v3009_v38, %v4954_v46  ;;  %v2990_v35 = vcombine.high %v2988_v45, %v2988_v45 }
 0x51d   :  { %v5003_v6 = vrot.slane %v3158_v17, %v4954_v46  ;;  %v5016_v1 = vrot.slane %v3159_v23, %v4954_v46  ;;  %v3035_v23 = vrot.slane %v3027_v43, %v4954_v46  ;;  %v3053_v43 = vrot.slane %v3045_v24, %v4954_v46 }
 0x51e   :  { %v3025_v51 = vcombine.high %v3017_v9, %v3017_v9  ;;  %v3078_v24 = vrot.slane %v3064_v28, %v4954_v46  ;;  %v3062_v28 = vcombine.high %v3060_v58, %v3060_v58 }
 0x51f   :  { %5653 = vst [vmem:[#allocation26_spill] sm:$0xff] %v5016_v1  ;;  %v5022_v36 = vcombine.high %v5003_v6, %v5003_v6  ;;  %v5041_v44 = vcombine.high %v5016_v1, %v5016_v1  ;;  %v5048_v2 = vrot.slane %v5003_v6, 1  ;;  %v5064_v17 = vrot.slane %v5016_v1, 1 }
 0x520   :  { %2568 = vmatmul.mubr.bf16.gmra.mxu0 %v1877_v26  ;;  %v5076_v38 = vadd.f32 %v5003_v6, %v2981_v41  ;;  %v5093_v41 = vadd.f32 %v5016_v1, %v2999_v59 }
 0x521   :  { %5655 = vst [vmem:[#allocation28_spill] sm:$0xff] %v5041_v44  ;;  %5656 = vst [vmem:[#allocation29_spill] sm:$0xff] %v5048_v2  ;;  %v5051_v49 = vrot.slane %v5022_v36, 1  ;;  %v5070_v30 = vrot.slane %v5041_v44, 1  ;;  %v5079_v39 = vadd.f32 %v5022_v36, %v2988_v45  ;;  %v5086_v31 = vadd.f32 %v5048_v2, %v2989_v3 }
 0x522   :  { %5658 = vst [vmem:[#allocation31_spill] sm:$0xff] %v5064_v17  ;;  %5662 = vst [vmem:[#allocation35_spill] sm:$0xff] %v5093_v41  ;;  %v3043_v45 = vcombine.high %v3035_v23, %v3035_v23  ;;  %v5097_v0 = vadd.f32 %v5064_v17, %v3007_v48  ;;  %v5100_v42 = vadd.f32 %v5041_v44, %v3006_v61 }
 0x523   :  { %5657 = vst [vmem:[#allocation30_spill] sm:$0xff] %v5051_v49  ;;  %5659 = vst [vmem:[#allocation32_spill] sm:$0xff] %v5070_v30  ;;  %v5090_v27 = vadd.f32 %v5051_v49, %v2990_v35  ;;  %v5103_v3 = vadd.f32 %v5070_v30, %v3008_v16  ;;  %v5108_v35 = vadd.f32 %v5003_v6, %v3017_v9 }
 0x524   :  { %5660 = vst [vmem:[#allocation33_spill] sm:$0xff] %v5086_v31  ;;  %v3044_v31 = vcombine.high %v3042_v32, %v3042_v32  ;;  %v5111_v59 = vadd.f32 %v5022_v36, %v3024_v20  ;;  %v3061_v41 = vcombine.high %v3053_v43, %v3053_v43  ;;  %v5116_v48 = vadd.f32 %v5048_v2, %v3025_v51 }
 0x525   :  { %5661 = vst [vmem:[#allocation34_spill] sm:$0xff] %v5090_v27  ;;  %5663 = vst [vmem:[#allocation36_spill] sm:$0xff] %v5103_v3  ;;  %v5119_v61 = vadd.f32 %v5051_v49, %v3026_v40  ;;  %v5122_v16 = vadd.f32 %v5016_v1, %v3035_v23  ;;  %v3079_v3 = vcombine.high %v3071_v8, %v3071_v8 }
 0x526   :  { %5664 = vst [vmem:[#allocation37_spill] sm:$0xff] %v5108_v35  ;;  %5665 = vst [vmem:[#allocation38_spill] sm:$0xff] %v5111_v59  ;;  %v5125_v9 = vadd.f32 %v5064_v17, %v3043_v45  ;;  %v5128_v20 = vadd.f32 %v5041_v44, %v3042_v32  ;;  %v3080_v59 = vcombine.high %v3078_v24, %v3078_v24 }
 0x527   :  { %v5668_v35 = vcombine.low %v4931_v37, %v4933_v11  ;;  %v5137_v40 = vadd.f32 %v5070_v30, %v3044_v31  ;;  %v5140_v23 = vadd.f32 %v5003_v6, %v3053_v43  ;;  %v5671_v45 = vcombine.high %v4931_v37, %v4933_v11 }
 0x528   :  { %5666 = vst [vmem:[#allocation39_spill] sm:$0xff] %v5125_v9  ;;  %5667 = vst [vmem:[#allocation40_spill] sm:$0xff] %v5128_v20  ;;  %v3099_v32 = vcombine.low %v4941_v63, %v4949_v7  ;;  %v5156_v31 = vadd.f32 %v5022_v36, %v3060_v58  ;;  %v5159_v43 = vadd.f32 %v5051_v49, %v3062_v28 }
 0x529   :  { %v5134_v51 = vrot.slane %v5668_v35, %v4954_v46  ;;  %5670 = vst [vmem:[#allocation42_spill] sm:$0xff] %v5140_v23  ;;  %v5146_v9 = vrot.slane %v5671_v45, %v4954_v46  ;;  %v5153_v35 = vadd.f32 %v5048_v2, %v3061_v41  ;;  %v5162_v23 = vadd.f32 %v5016_v1, %v3071_v8  ;;  %v5682_v2 = vld [vmem:[#allocation35_spill] sm:$0xff] }
 0x52a   :  { %v5167_v11 = vadd.f32 %v5064_v17, %v3079_v3  ;;  %v5170_v63 = vadd.f32 %v5041_v44, %v3078_v24  ;;  %v5175_v58 = vadd.f32 %v5070_v30, %v3080_v59  ;;  %v5184_v24 = vrot.slane %v3099_v32, %v4954_v46  ;;  %v1516_v32 = vld [vmem:[%s5623_s15] sm:$0x3]  ;;  %s4482_s15 = smov [#allocation17]  }
 0x52b   :  { %5669 = vst [vmem:[#allocation41_spill] sm:$0xff] %v5134_v51  ;;  %5672 = vst [vmem:[#allocation43_spill] sm:$0xff] %v5146_v9  ;;  %v5190_v59 = vadd.f32 %v5003_v6, %v5134_v51  ;;  %s3624_s2 = sshll.u32 %s4482_s15, 4  ;;  %s3625_s2 = int_to_ptr.vmem [resolvable:$true] %s3624_s2 }
 0x52c   :  { %5673 = vst [vmem:[#allocation44_spill] sm:$0xff] %v5184_v24  ;;  %s4429_s24 = scalar_lea.vmem %s3625_s2, 1024  ;;  %p4434_p4 = scmp.lt.s32.totalorder %s3625_s2, %s3625_s2 }
 0x52d   :  { %5674 = vst [vmem:[#allocation45_spill] sm:$0xff] %v5190_v59  ;;  %p4430_p3 = scmp.ne.s32.totalorder %s3625_s2, %s4429_s24  ;;  %p4435_p5 = scmp.lt.s32.totalorder %s4429_s24, %s4429_s24 }
 0x52f   :  { %p4436_p6 = por %p4435_p5, %p4434_p4 }
 0x531   :  { %p4437_p7 = pnand %p4436_p6, %p4430_p3 }
 0x588   :  { %v4969_v54 = vpop.f32.mrf.mxu0  ;;  %v4983_v14 = vpop.f32.mrf.mxu1 }
 0x58a   :  { %v4971_v50 = vpop.f32.mrf.mxu0  ;;  %v4990_v4 = vpop.f32.mrf.mxu1 }
 0x58b   :  { %v2579_v28 = vrot.slane %v4971_v50, 7 }
 0x58c   :  { %v4973_v47 = vpop.f32.mrf.mxu0  ;;  %v4996_v13 = vpop.f32.mrf.mxu1 }
 0x58d   :  { %v2580_v7 = vrot.slane %v4973_v47, 7  ;;  %v2578_v47 = vrot.slane %v4969_v54, 7 }
 0x58e   :  { %v4975_v55 = vpop.f32.mrf.mxu0  ;;  %v5000_v25 = vpop.f32.mrf.mxu1 }
 0x58f   :  { %v2581_v8 = vrot.slane %v4975_v55, 7  ;;  %v2606_v54 = vsel %vm689_vm1, %v2578_v47, %v2580_v7 }
 0x590   :  { %v4977_v29 = vpop.f32.mrf.mxu0  ;;  %v5018_v57 = vpop.f32.mrf.mxu1 }
 0x591   :  { %v2582_v45 = vrot.slane %v4977_v29, 7 }
 0x592   :  { %v4979_v62 = vpop.f32.mrf.mxu0  ;;  %v5045_v15 = vpop.f32.mrf.mxu1 }
 0x593   :  { %v2583_v3 = vrot.slane %v4979_v62, 7  ;;  %v2604_v30 = vsel %vm689_vm1, %v2580_v7, %v2582_v45  ;;  %v2628_v7 = vadd.f32 %v2606_v54, %v4996_v13 }
 0x594   :  { %v4981_v19 = vpop.f32.mrf.mxu0  ;;  %v5073_v33 = vpop.f32.mrf.mxu1 }
 0x595   :  { %v2584_v41 = vrot.slane %v4981_v19, 7  ;;  %v2605_v49 = vsel %vm689_vm1, %v2581_v8, %v2583_v3 }
 0x596   :  { %v4985_v60 = vpop.f32.mrf.mxu0  ;;  %v5105_v52 = vpop.f32.mrf.mxu1 }
 0x597   :  { %v2585_v62 = vrot.slane %v4985_v60, 7 }
 0x598   :  { %v4994_v10 = vpop.f32.mrf.mxu0  ;;  %v5150_v20 = vpop.f32.mrf.mxu1 }
 0x599   :  { %v2586_v55 = vrot.slane %v4994_v10, 7  ;;  %v5210_v10 = vadd.f32 %v5022_v36, %v5146_v9  ;;  %v5226_v36 = vrot.slane %v1516_v32, %v4865_v56 }
 0x59a   :  { %v4998_v21 = vpop.f32.mrf.mxu0  ;;  %v2488_v17 = vpop.f32.mrf.mxu1 }
 0x59b   :  { %v2587_v29 = vrot.slane %v4998_v21, 7  ;;  %5676 = vst [vmem:[#allocation46_spill] sm:$0xff] %v5210_v10  ;;  %v2607_v21 = vsel %vm689_vm1, %v2579_v28, %v2581_v8  ;;  %v5229_v10 = vrot.slane %v1516_v32, %v4873_v12  ;;  %v2600_v60 = vsel %vm689_vm1, %v2584_v41, %v2586_v55 }
 0x59c   :  { %v5005_v26 = vpop.f32.mrf.mxu0  ;;  %v2490_v44 = vpop.f32.mrf.mxu1  ;;  %v2602_v12 = vsel %vm689_vm1, %v2582_v45, %v2584_v41  ;;  %v2603_v32 = vsel %vm689_vm1, %v2583_v3, %v2585_v62 }
 0x59d   :  { %v2601_v19 = vsel %vm689_vm1, %v2585_v62, %v2587_v29 }
 0x59e   :  { %v5024_v34 = vpop.f32.mrf.mxu0  ;;  %v2492_v8 = vpop.f32.mrf.mxu1 }
 0x59f   :  { %v2589_v3 = vrot.slane %v5024_v34, 7  ;;  %v5266_v34 = vadd.f32 %v2602_v12, %v5073_v33 }
 0x5a0   :  { %v5057_v53 = vpop.f32.mrf.mxu0 }
 0x5a1   :  { %v2599_v12 = vsel %vm689_vm1, %v2587_v29, %v2589_v3 }
 0x5a2   :  { %v5083_v22 = vpop.f32.mrf.mxu0 }
 0x5a3   :  { %v5642_v18 = vrot.slane %v5083_v22, 7 }
 0x5a4   :  { %v5113_v27 = vpop.f32.mrf.mxu0 }
 0x5a5   :  { %v5675_v6 = vrot.slane %v5113_v27, 7 }
 0x5a6   :  { %v5164_v37 = vpop.f32.mrf.mxu0 }
 0x5a7   :  { %v2608_v50 = vsel %vm689_vm1, %v5675_v6, %v2578_v47  ;;  %v5677_v47 = vrot.slane %v5164_v37, 7 }
 0x5a8   :  { %v2610_v24 = vsel %vm705_vm3, %v2608_v50, 0.0 }
 0x5a9   :  { %v2609_v6 = vsel %vm689_vm1, %v5677_v47, %v2579_v28  ;;  %v2629_v28 = vadd.f32 %v2607_v21, %v5000_v25  ;;  %v2630_v47 = vadd.f32 %v2604_v30, %v5018_v57  ;;  %v2618_v25 = vsel %vm705_vm3, %v2600_v60, 0.0 }
 0x5aa   :  { %v2611_v54 = vsel %vm705_vm3, %v2609_v6, 0.0  ;;  %v2619_v57 = vsel %vm705_vm3, %v2601_v19, 0.0  ;;  %v2588_v30 = vrot.slane %v5005_v26, 7  ;;  %v2626_v41 = vadd.f32 %v2610_v24, %v4983_v14 }
 0x5ab   :  { %v2590_v60 = vrot.slane %v5057_v53, 7  ;;  %v2627_v26 = vadd.f32 %v2611_v54, %v4990_v4  ;;  %v2631_v14 = vadd.f32 %v2605_v49, %v5045_v15  ;;  %v5276_v53 = vadd.f32 %v2618_v25, %v5150_v20  ;;  %v2496_v54 = vpop.f32.mrf.mxu1 }
 0x5ac   :  { %v2598_v4 = vsel %vm689_vm1, %v2586_v55, %v2588_v30  ;;  %v5280_v33 = vadd.f32 %v2619_v57, %v2488_v17  ;;  %v2597_v20 = vsel %vm689_vm1, %v2589_v3, %v5642_v18 }
 0x5ad   :  { %v5294_v25 = vadd.f32 %v2598_v4, %v2490_v44 }
 0x5c8   :  { %v5206_v59 = vpop.f32.mrf.mxu0 }
 0x5c9   :  { %v5639_v9 = vrot.slane %v5206_v59, 1 }
 0x5ca   :  { %v5223_v1 = vpop.f32.mrf.mxu0 }
 0x5cb   :  { %v5640_v21 = vrot.slane %v5223_v1, 1 }
 0x5cc   :  { %v2543_v13 = vpop.f32.mrf.mxu0 }
 0x5cd   :  { %v2644_v50 = vrot.slane %v2543_v13, 1 }
 0x5ce   :  { %v2545_v45 = vpop.f32.mrf.mxu0 }
 0x5cf   :  { %v2670_v62 = vsel %vm749_vm2, %v5639_v9, %v2644_v50  ;;  %v2645_v6 = vrot.slane %v2545_v45, 1  ;;  %v5273_v45 = vadd.f32 %v2603_v32, %v5105_v52  ;;  %v2596_v52 = vsel %vm689_vm1, %v2588_v30, %v2590_v60  ;;  %v2498_v30 = vpop.f32.mrf.mxu1 }
 0x5d0   :  { %v2690_v19 = vadd.f32 %v2670_v62, %v2626_v41  ;;  %v2549_v13 = vpop.f32.mrf.mxu0  ;;  %v5302_v3 = vadd.f32 %v2596_v52, %v2496_v54  ;;  %v5678_v54 = vrot.slane %v5113_v27, 7 }
 0x5d1   :  { %v2671_v24 = vsel %vm749_vm2, %v5640_v21, %v2645_v6  ;;  %v2646_v9 = vrot.slane %v2549_v13, 1 }
 0x5d2   :  { %v2691_v15 = vadd.f32 %v2671_v24, %v2627_v26  ;;  %v2551_v49 = vpop.f32.mrf.mxu0  ;;  %v2717_v55 = vadd.f32 %v5226_v36, %v2690_v19  ;;  %v5298_v26 = vadd.f32 %v2599_v12, %v2492_v8  ;;  %v5304_v19 = vadd.f32 %v2597_v20, %v2498_v30 }
 0x5d3   :  { %v2668_v41 = vsel %vm749_vm2, %v2644_v50, %v2646_v9  ;;  %v2647_v62 = vrot.slane %v2551_v49, 1  ;;  %v5318_v12 = vsel %vm689_vm1, %v2590_v60, %v5678_v54 }
 0x5d4   :  { %v2718_v17 = vadd.f32 %v5229_v10, %v2691_v15  ;;  %v2553_v32 = vpop.f32.mrf.mxu0  ;;  %v2692_v29 = vadd.f32 %v2668_v41, %v2628_v7 }
 0x5d5   :  { %v2669_v50 = vsel %vm749_vm2, %v2645_v6, %v2647_v62  ;;  %v2648_v57 = vrot.slane %v2553_v32, 1 }
 0x5d6   :  { %v2749_v13 = vcombine.low %v2717_v55, %v2718_v17  ;;  %v2750_v24 = vcombine.high %v2717_v55, %v2718_v17  ;;  %v2693_v49 = vadd.f32 %v2669_v50, %v2629_v28  ;;  %v5300_v21 = vpop.f32.mrf.mxu0 }
 0x5d7   :  { %v2666_v44 = vsel %vm749_vm2, %v2646_v9, %v2648_v57  ;;  %v5643_v7 = vrot.slane %v5300_v21, 1  ;;  %v2719_v9 = vadd.f32 %v5226_v36, %v2692_v29 }
 0x5d8   :  { %v2757_v6 = vrot.slane %v2749_v13, %v4954_v46  ;;  %v2764_v8 = vrot.slane %v2750_v24, %v4954_v46  ;;  %v2720_v4 = vadd.f32 %v5229_v10, %v2693_v49  ;;  %v2694_v28 = vadd.f32 %v2666_v44, %v2630_v47  ;;  %v5312_v15 = vpop.f32.mrf.mxu0 }
 0x5d9   :  { %v2667_v41 = vsel %vm749_vm2, %v2647_v62, %v5643_v7  ;;  %v5641_v52 = vrot.slane %v5312_v15, 1 }
 0x5da   :  { %v2765_v20 = vcombine.high %v2757_v6, %v2757_v6  ;;  %v2766_v47 = vcombine.high %v2764_v8, %v2764_v8  ;;  %v2925_v55 = vmax.f32 %v2757_v6, 0.0  ;;  %v2927_v17 = vmax.f32 %v2764_v8, 0.0 }
 0x5db   :  { %v2767_v32 = vcombine.low %v2719_v9, %v2720_v4  ;;  %v2768_v27 = vcombine.high %v2719_v9, %v2720_v4  ;;  %v2721_v50 = vadd.f32 %v5226_v36, %v2694_v28  ;;  %v2695_v60 = vadd.f32 %v2667_v41, %v2631_v14  ;;  %v5679_v14 = vld [vmem:[#allocation33_spill] sm:$0xff]  ;;  %v5680_v4 = vld [vmem:[#allocation34_spill] sm:$0xff]  ;;  %v5340_v9 = vpop.f32.mrf.mxu0 }
 0x5dc   :  { %v2926_v30 = vmax.f32 %v2765_v20, 0.0  ;;  %v2928_v13 = vmax.f32 %v2766_v47, 0.0  ;;  %v3220_v29 = vadd.f32 %v5076_v38, %v2925_v55  ;;  %v3222_v24 = vadd.f32 %v5079_v39, %v2927_v17  ;;  %v5681_v39 = vld [vmem:[#allocation27_spill] sm:$0xff] }
 0x5dd   :  { %v2775_v62 = vrot.slane %v2767_v32, %v4954_v46  ;;  %v2782_v49 = vrot.slane %v2768_v27, %v4954_v46  ;;  %v2722_v44 = vadd.f32 %v5229_v10, %v2695_v60  ;;  %v2664_v6 = vsel %vm749_vm2, %v2648_v57, %v5641_v52  ;;  %v5350_v18 = vpop.f32.mrf.mxu0 }
 0x5de   :  { %v3221_v8 = vadd.f32 %v5679_v14, %v2926_v30  ;;  %v3223_v28 = vadd.f32 %v5680_v4, %v2928_v13  ;;  %v3287_v38 = vrot.slane %v3220_v29, %v4865_v56  ;;  %v3291_v54 = vrot.slane %v3220_v29, %v5681_v39 }
 0x5df   :  { %v3303_v41 = vrot.slane %v3222_v24, %v4865_v56  ;;  %v3307_v20 = vrot.slane %v3222_v24, %v5681_v39  ;;  %v2783_v47 = vcombine.high %v2775_v62, %v2775_v62  ;;  %v2784_v55 = vcombine.high %v2782_v49, %v2782_v49 }
 0x5e0   :  { %v3295_v57 = vrot.slane %v3221_v8, %v4865_v56  ;;  %v3299_v17 = vrot.slane %v3221_v8, %v5681_v39  ;;  %v3311_v32 = vrot.slane %v3223_v28, %v4865_v56  ;;  %v3315_v27 = vrot.slane %v3223_v28, %v5681_v39 }
 0x5e1   :  { %v2929_v60 = vmax.f32 %v2775_v62, 0.0  ;;  %v2930_v30 = vmax.f32 %v2783_v47, 0.0  ;;  %v2931_v13 = vmax.f32 %v2782_v49, 0.0  ;;  %v2932_v29 = vmax.f32 %v2784_v55, 0.0  ;;  %v5683_v47 = vld [vmem:[#allocation36_spill] sm:$0xff] }
 0x5e2   :  { %v3541_v14 = vsel %vm3540_vm5, %v3295_v57, %v3287_v38  ;;  %v3554_v4 = vsel %vm3540_vm5, %v3299_v17, %v3291_v54  ;;  %v2785_v24 = vcombine.low %v2721_v50, %v2722_v44  ;;  %v2786_v52 = vcombine.high %v2721_v50, %v2722_v44  ;;  %v5368_v57 = vpop.f32.mrf.mxu0 }
 0x5e3   :  { %v3543_v7 = vsel %vm3542_vm6, %v3303_v41, %v3541_v14  ;;  %v3555_v8 = vsel %vm3542_vm6, %v3307_v20, %v3554_v4  ;;  %v3224_v51 = vadd.f32 %v5682_v2, %v2929_v60  ;;  %v3225_v28 = vadd.f32 %v5097_v0, %v2930_v30 }
 0x5e4   :  { %v3545_v62 = vsel %vm3544_vm7, %v3311_v32, %v3543_v7  ;;  %v3556_v49 = vsel %vm3544_vm7, %v3315_v27, %v3555_v8  ;;  %v3226_v38 = vadd.f32 %v5100_v42, %v2931_v13  ;;  %v3227_v54 = vadd.f32 %v5683_v47, %v2932_v29 }
 0x5e5   :  { %v3319_v50 = vrot.slane %v3224_v51, %v4865_v56  ;;  %v3323_v44 = vrot.slane %v3224_v51, %v5681_v39  ;;  %v3327_v41 = vrot.slane %v3225_v28, %v4865_v56  ;;  %v3331_v20 = vrot.slane %v3225_v28, %v5681_v39 }
 0x5e6   :  { %v3335_v2 = vrot.slane %v3226_v38, %v4865_v56  ;;  %v3339_v0 = vrot.slane %v3226_v38, %v5681_v39  ;;  %v3343_v7 = vrot.slane %v3227_v54, %v4865_v56  ;;  %v3347_v55 = vrot.slane %v3227_v54, %v5681_v39  ;;  %v5383_v38 = vpop.f32.mrf.mxu0 }
 0x5e7   :  { %v3547_v42 = vsel %vm3546_vm8, %v3319_v50, %v3545_v62  ;;  %v3557_v17 = vsel %vm3546_vm8, %v3323_v44, %v3556_v49  ;;  %v2793_v51 = vrot.slane %v2785_v24, %v4954_v46  ;;  %v2800_v32 = vrot.slane %v2786_v52, %v4954_v46  ;;  %v2500_v44 = vpop.f32.mrf.mxu1 }
 0x5e8   :  { %v3549_v27 = vsel %vm3548_vm9, %v3327_v41, %v3547_v42  ;;  %v3558_v60 = vsel %vm3548_vm9, %v3331_v20, %v3557_v17  ;;  %v2680_v13 = vsel %vm769_vm4, %v2664_v6, 0.0  ;;  %v2651_v29 = vrot.slane %v5340_v9, 1  ;;  %v5686_v41 = vld [vmem:[#allocation37_spill] sm:$0xff] }
 0x5e9   :  { %v3551_v14 = vsel %vm3550_vm10, %v3335_v2, %v3549_v27  ;;  %v3559_v4 = vsel %vm3550_vm10, %v3339_v0, %v3558_v60  ;;  %v2801_v8 = vcombine.high %v2793_v51, %v2793_v51  ;;  %v2802_v28 = vcombine.high %v2800_v32, %v2800_v32  ;;  %v5687_v2 = vld [vmem:[#allocation38_spill] sm:$0xff] }
 0x5ea   :  { %v3553_v62 = vsel %vm3552_vm11, %v3343_v7, %v3551_v14  ;;  %v3560_v24 = vsel %vm3552_vm11, %v3347_v55, %v3559_v4  ;;  %v2933_v52 = vmax.f32 %v2793_v51, 0.0  ;;  %v2935_v49 = vmax.f32 %v2800_v32, 0.0 }
 0x5eb   :  { %3611 = vst [vmem:[#allocation17] sm:$0xff] %v3553_v62  ;;  %3612 = vst [vmem:[#allocation17 + $0x8] sm:$0xff] %v3560_v24  ;;  %v2934_v47 = vmax.f32 %v2801_v8, 0.0  ;;  %v2936_v6 = vmax.f32 %v2802_v28, 0.0  ;;  %v2696_v9 = vadd.f32 %v2680_v13, %v5266_v34  ;;  %v5685_v54 = vrot.slane %v5300_v21, 1  ;;  %v5412_v13 = vpop.f32.mrf.mxu0 }
 0x5ec   :  { %v3228_v20 = vadd.f32 %v5686_v41, %v2933_v52  ;;  %v3230_v0 = vadd.f32 %v5687_v2, %v2935_v49  ;;  %v2652_v55 = vrot.slane %v5350_v18, 1  ;;  %v5396_v42 = vadd.f32 %v5318_v12, %v2500_v44 }
 0x5ed   :  { %v2665_v50 = vsel %vm749_vm2, %v5685_v54, %v2651_v29  ;;  %v3229_v34 = vadd.f32 %v5116_v48, %v2934_v47  ;;  %v3231_v21 = vadd.f32 %v5119_v61, %v2936_v6  ;;  %v5688_v51 = vrot.slane %v5164_v37, 7  ;;  %v5431_v54 = vpop.f32.mrf.mxu0 }
 0x5ee   :  { %v2681_v7 = vsel %vm769_vm4, %v2665_v50, 0.0  ;;  %v5689_v32 = vrot.slane %v5083_v22, 7  ;;  %v3351_v60 = vrot.slane %v3228_v20, %v4865_v56  ;;  %v3355_v18 = vrot.slane %v3228_v20, %v5681_v39 }
 0x5ef   :  { %v2697_v17 = vadd.f32 %v2681_v7, %v5273_v45  ;;  %v2723_v12 = vadd.f32 %v5226_v36, %v2696_v9  ;;  %v3359_v48 = vrot.slane %v3229_v34, %v4865_v56  ;;  %v3363_v61 = vrot.slane %v3229_v34, %v5681_v39 }
 0x5f0   :  { %v5407_v27 = vsel %vm689_vm1, %v5689_v32, %v5688_v51  ;;  %v3367_v37 = vrot.slane %v3230_v0, %v4865_v56  ;;  %v3371_v22 = vrot.slane %v3230_v0, %v5681_v39  ;;  %v5690_v14 = vrot.slane %v5312_v15, 1 }
 0x5f1   :  { %v2724_v45 = vadd.f32 %v5229_v10, %v2697_v17  ;;  %v2653_v8 = vrot.slane %v5368_v57, 1  ;;  %v2654_v28 = vrot.slane %v5383_v38, 1  ;;  %v3375_v62 = vrot.slane %v3231_v21, %v4865_v56 }
 0x5f2   :  { %v2662_v4 = vsel %vm749_vm2, %v5690_v14, %v2652_v55  ;;  %v3561_v24 = vsel %vm3540_vm5, %v3359_v48, %v3351_v60  ;;  %v3568_v52 = vsel %vm3540_vm5, %v3363_v61, %v3355_v18  ;;  %v2655_v49 = vrot.slane %v5412_v13, 1 }
 0x5f3   :  { %v3562_v47 = vsel %vm3542_vm6, %v3367_v37, %v3561_v24  ;;  %v3569_v6 = vsel %vm3542_vm6, %v3371_v22, %v3568_v52  ;;  %v2803_v15 = vcombine.low %v2723_v12, %v2724_v45  ;;  %v2804_v9 = vcombine.high %v2723_v12, %v2724_v45  ;;  %v5691_v37 = vld [vmem:[#allocation40_spill] sm:$0xff]  ;;  %v5693_v24 = vld [vmem:[#allocation39_spill] sm:$0xff] }
 0x5f4   :  { %v3379_v57 = vrot.slane %v3231_v21, %v5681_v39  ;;  %v3563_v50 = vsel %vm3544_vm7, %v3375_v62, %v3562_v47  ;;  %v2698_v44 = vadd.f32 %v2662_v4, %v5276_v53  ;;  %v2663_v41 = vsel %vm749_vm2, %v2651_v29, %v2653_v8 }
 0x5f5   :  { %v2811_v20 = vrot.slane %v2803_v15, %v4954_v46  ;;  %v2818_v2 = vrot.slane %v2804_v9, %v4954_v46  ;;  %v2699_v0 = vadd.f32 %v2663_v41, %v5280_v33  ;;  %v2660_v7 = vsel %vm749_vm2, %v2652_v55, %v2654_v28 }
 0x5f6   :  { %v3570_v34 = vsel %vm3544_vm7, %v3379_v57, %v3569_v6  ;;  %v2700_v21 = vadd.f32 %v2660_v7, %v5294_v25  ;;  %v2661_v53 = vsel %vm749_vm2, %v2653_v8, %v2655_v49  ;;  %v2656_v29 = vrot.slane %v5431_v54, 1 }
 0x5f7   :  { %v2819_v17 = vcombine.high %v2811_v20, %v2811_v20  ;;  %v2820_v51 = vcombine.high %v2818_v2, %v2818_v2  ;;  %v2937_v32 = vmax.f32 %v2811_v20, 0.0  ;;  %v2939_v33 = vmax.f32 %v2818_v2, 0.0 }
 0x5f8   :  { %v2725_v60 = vadd.f32 %v5226_v36, %v2698_v44  ;;  %v2726_v18 = vadd.f32 %v5229_v10, %v2699_v0  ;;  %v2727_v55 = vadd.f32 %v5226_v36, %v2700_v21  ;;  %v2701_v12 = vadd.f32 %v2661_v53, %v5298_v26 }
 0x5f9   :  { %v2938_v25 = vmax.f32 %v2819_v17, 0.0  ;;  %v2940_v48 = vmax.f32 %v2820_v51, 0.0  ;;  %v3232_v61 = vadd.f32 %v5122_v16, %v2937_v32  ;;  %v3234_v22 = vadd.f32 %v5691_v37, %v2939_v33 }
 0x5fa   :  { %v2821_v45 = vcombine.low %v2725_v60, %v2726_v18  ;;  %v2822_v14 = vcombine.high %v2725_v60, %v2726_v18  ;;  %v2728_v4 = vadd.f32 %v5229_v10, %v2701_v12  ;;  %v5692_v8 = vrot.slane %v5206_v59, 1  ;;  %v2575_v18 = vpop.f32.mrf.mxu0 }
 0x5fb   :  { %v3233_v52 = vadd.f32 %v5693_v24, %v2938_v25  ;;  %v3235_v47 = vadd.f32 %v5137_v40, %v2940_v48  ;;  %v3383_v26 = vrot.slane %v3232_v61, %v4865_v56  ;;  %v3387_v6 = vrot.slane %v3232_v61, %v5681_v39  ;;  %v2502_v61 = vpop.f32.mrf.mxu1 }
 0x5fc   :  { %v2672_v62 = vsel %vm749_vm2, %v2656_v29, %v5692_v8  ;;  %v3399_v16 = vrot.slane %v3234_v22, %v4865_v56  ;;  %v3403_v15 = vrot.slane %v3234_v22, %v5681_v39  ;;  %v2829_v9 = vrot.slane %v2821_v45, %v4954_v46 }
 0x5fd   :  { %v2836_v54 = vrot.slane %v2822_v14, %v4954_v46  ;;  %v3391_v59 = vrot.slane %v3233_v52, %v4865_v56  ;;  %v3395_v57 = vrot.slane %v3233_v52, %v5681_v39  ;;  %v3407_v44 = vrot.slane %v3235_v47, %v4865_v56 }
 0x5fe   :  { %v3411_v40 = vrot.slane %v3235_v47, %v5681_v39  ;;  %v3564_v41 = vsel %vm3546_vm8, %v3383_v26, %v3563_v50  ;;  %v3571_v20 = vsel %vm3546_vm8, %v3387_v6, %v3570_v34  ;;  %v2837_v2 = vcombine.high %v2829_v9, %v2829_v9  ;;  %v5694_v34 = vld [vmem:[#allocation42_spill] sm:$0xff] }
 0x5ff   :  { %v2838_v0 = vcombine.high %v2836_v54, %v2836_v54  ;;  %v3565_v7 = vsel %vm3548_vm9, %v3391_v59, %v3564_v41  ;;  %v3572_v21 = vsel %vm3548_vm9, %v3395_v57, %v3571_v20  ;;  %v2941_v53 = vmax.f32 %v2829_v9, 0.0 }
 0x600   :  { %v2943_v17 = vmax.f32 %v2836_v54, 0.0  ;;  %v3566_v51 = vsel %vm3550_vm10, %v3399_v16, %v3565_v7  ;;  %v3573_v32 = vsel %vm3550_vm10, %v3403_v15, %v3572_v21  ;;  %v2942_v33 = vmax.f32 %v2837_v2, 0.0 }
 0x601   :  { %v2944_v60 = vmax.f32 %v2838_v0, 0.0  ;;  %v3567_v12 = vsel %vm3552_vm11, %v3407_v44, %v3566_v51  ;;  %v3574_v50 = vsel %vm3552_vm11, %v3411_v40, %v3573_v32  ;;  %v3236_v25 = vadd.f32 %v5694_v34, %v2941_v53 }
 0x602   :  { %v3238_v48 = vadd.f32 %v5156_v31, %v2943_v17  ;;  %3613 = vst [vmem:[#allocation17 + $0x10] sm:$0xff] %v3567_v12  ;;  %3614 = vst [vmem:[#allocation17 + $0x18] sm:$0xff] %v3574_v50  ;;  %v3237_v37 = vadd.f32 %v5153_v35, %v2942_v33  ;;  %v2839_v45 = vcombine.low %v2727_v55, %v2728_v4  ;;  %v2657_v47 = vrot.slane %v2575_v18, 1 }
 0x603   :  { %v3239_v22 = vadd.f32 %v5159_v43, %v2944_v60  ;;  %v2840_v14 = vcombine.high %v2727_v55, %v2728_v4  ;;  %v2641_v8 = vadd.f32 %v5407_v27, %v2502_v61  ;;  %v3415_v24 = vrot.slane %v3236_v25, %v4865_v56 }
 0x604   :  { %v2658_v52 = vsel %vm749_vm2, %v2654_v28, %v2656_v29  ;;  %v3419_v31 = vrot.slane %v3236_v25, %v5681_v39  ;;  %v3423_v26 = vrot.slane %v3237_v37, %v4865_v56  ;;  %v3427_v35 = vrot.slane %v3237_v37, %v5681_v39 }
 0x605   :  { %v3431_v43 = vrot.slane %v3238_v48, %v4865_v56  ;;  %v3435_v55 = vrot.slane %v3238_v48, %v5681_v39  ;;  %v2847_v27 = vrot.slane %v2839_v45, %v4954_v46  ;;  %v2854_v4 = vrot.slane %v2840_v14, %v4954_v46 }
 0x606   :  { %v2688_v38 = vsel %vm769_vm4, %v2672_v62, 0.0  ;;  %v3439_v28 = vrot.slane %v3239_v22, %v4865_v56  ;;  %v3575_v29 = vsel %vm3540_vm5, %v3423_v26, %v3415_v24  ;;  %v3582_v6 = vsel %vm3540_vm5, %v3427_v35, %v3419_v31  ;;  %v5699_v31 = vld [vmem:[#allocation29_spill] sm:$0xff] }
 0x607   :  { %v2702_v16 = vadd.f32 %v2658_v52, %v5302_v3  ;;  %v3576_v15 = vsel %vm3542_vm6, %v3431_v43, %v3575_v29  ;;  %v2855_v9 = vcombine.high %v2847_v27, %v2847_v27  ;;  %v2856_v54 = vcombine.high %v2854_v4, %v2854_v4  ;;  %v5697_v52 = vld [vmem:[#allocation41_spill] sm:$0xff]  ;;  %v5704_v29 = vld [vmem:[#allocation26_spill] sm:$0xff] }
 0x608   :  { %v2659_v59 = vsel %vm749_vm2, %v2655_v49, %v2657_v47  ;;  %v3583_v57 = vsel %vm3542_vm6, %v3435_v55, %v3582_v6  ;;  %v2945_v62 = vmax.f32 %v2847_v27, 0.0  ;;  %v2947_v44 = vmax.f32 %v2854_v4, 0.0  ;;  %v5700_v55 = vld [vmem:[#allocation43_spill] sm:$0xff]  ;;  %v5702_v4 = vld [vmem:[#allocation30_spill] sm:$0xff] }
 0x609   :  { %v2704_v40 = vadd.f32 %v2688_v38, %v5396_v42  ;;  %v3443_v41 = vrot.slane %v3239_v22, %v5681_v39  ;;  %v3577_v20 = vsel %vm3544_vm7, %v3439_v28, %v3576_v15  ;;  %v2946_v3 = vmax.f32 %v2855_v9, 0.0  ;;  %v5696_v22 = vld [vmem:[#allocation25_spill] sm:$0xff]  ;;  %v5703_v28 = vld [vmem:[#allocation44_spill] sm:$0xff] }
 0x60a   :  { %v2948_v2 = vmax.f32 %v2856_v54, 0.0  ;;  %v3240_v0 = vadd.f32 %v5162_v23, %v2945_v62  ;;  %v3242_v7 = vadd.f32 %v5170_v63, %v2947_v44  ;;  %v5695_v13 = vrot.slane %v5223_v1, 1 }
 0x60b   :  { %v2703_v21 = vadd.f32 %v2659_v59, %v5304_v19  ;;  %v3584_v53 = vsel %vm3544_vm7, %v3443_v41, %v3583_v57  ;;  %v3241_v42 = vadd.f32 %v5167_v11, %v2946_v3  ;;  %v2729_v1 = vadd.f32 %v5226_v36, %v2702_v16  ;;  %v5705_v16 = vld [vmem:[#allocation28_spill] sm:$0xff] }
 0x60c   :  { %v2673_v49 = vsel %vm749_vm2, %v2657_v47, %v5695_v13  ;;  %v3243_v17 = vadd.f32 %v5175_v58, %v2948_v2  ;;  %v3447_v23 = vrot.slane %v3240_v0, %v4865_v56  ;;  %v3451_v63 = vrot.slane %v3240_v0, %v5681_v39 }
 0x60d   :  { %v2689_v51 = vsel %vm769_vm4, %v2673_v49, 0.0  ;;  %v2731_v5 = vadd.f32 %v5226_v36, %v2704_v40  ;;  %v3455_v32 = vrot.slane %v3241_v42, %v4865_v56  ;;  %v3459_v19 = vrot.slane %v3241_v42, %v5681_v39  ;;  %v5707_v40 = vld [vmem:[#allocation31_spill] sm:$0xff] }
 0x60e   :  { %v3463_v33 = vrot.slane %v3242_v7, %v4865_v56  ;;  %v3467_v11 = vrot.slane %v3242_v7, %v5681_v39  ;;  %v3578_v58 = vsel %vm3546_vm8, %v3447_v23, %v3577_v20  ;;  %v3585_v30 = vsel %vm3546_vm8, %v3451_v63, %v3584_v53  ;;  %v5708_v20 = vld [vmem:[#allocation32_spill] sm:$0xff]  ;;  %v5710_v23 = vld [vmem:[#allocation46_spill] sm:$0xff] }
 0x60f   :  { %v2705_v60 = vadd.f32 %v2689_v51, %v2641_v8  ;;  %v2730_v18 = vadd.f32 %v5229_v10, %v2703_v21  ;;  %v3471_v12 = vrot.slane %v3243_v17, %v4865_v56  ;;  %v3475_v50 = vrot.slane %v3243_v17, %v5681_v39  ;;  %v5709_v17 = vld [vmem:[#allocation45_spill] sm:$0xff] }
 0x610   :  { %v3579_v36 = vsel %vm3548_vm9, %v3455_v32, %v3578_v58  ;;  %v3586_v34 = vsel %vm3548_vm9, %v3459_v19, %v3585_v30  ;;  %v3116_v45 = vcombine.high %v5696_v22, %v5696_v22  ;;  %v5698_v47 = vcombine.high %v5697_v52, %v5697_v52 }
 0x611   :  { %v3580_v25 = vsel %vm3550_vm10, %v3463_v33, %v3579_v36  ;;  %v3587_v48 = vsel %vm3550_vm10, %v3467_v11, %v3586_v34  ;;  %v2732_v61 = vadd.f32 %v5229_v10, %v2705_v60  ;;  %v2857_v37 = vcombine.low %v2729_v1, %v2730_v18 }
 0x612   :  { %v3581_v14 = vsel %vm3552_vm11, %v3471_v12, %v3580_v25  ;;  %v3588_v8 = vsel %vm3552_vm11, %v3475_v50, %v3587_v48  ;;  %v2858_v24 = vcombine.high %v2729_v1, %v2730_v18  ;;  %v3213_v26 = vadd.f32 %v5699_v31, %v5698_v47 }
 0x613   :  { %3615 = vst [vmem:[#allocation17 + $0x20] sm:$0xff] %v3581_v14  ;;  %3616 = vst [vmem:[#allocation17 + $0x28] sm:$0xff] %v3588_v8  ;;  %v2865_v35 = vrot.slane %v2857_v37, %v4954_v46  ;;  %v2875_v43 = vcombine.low %v2731_v5, %v2732_v61  ;;  %v2876_v10 = vcombine.high %v2731_v5, %v2732_v61 }
 0x614   :  { %v5701_v27 = vcombine.high %v5700_v55, %v5700_v55  ;;  %v3216_v6 = vadd.f32 %v5704_v29, %v5703_v28  ;;  %v3218_v15 = vadd.f32 %v5705_v16, %v5696_v22  ;;  %v2872_v9 = vrot.slane %v2858_v24, %v4954_v46 }
 0x615   :  { %v2873_v54 = vcombine.high %v2865_v35, %v2865_v35  ;;  %v2883_v59 = vrot.slane %v2875_v43, %v4954_v46  ;;  %v2890_v57 = vrot.slane %v2876_v10, %v4954_v46  ;;  %v2949_v62 = vmax.f32 %v2865_v35, 0.0 }
 0x616   :  { %v3215_v38 = vadd.f32 %v5702_v4, %v5701_v27  ;;  %v5706_v44 = vcombine.high %v5703_v28, %v5703_v28  ;;  %v3219_v3 = vadd.f32 %v5708_v20, %v3116_v45  ;;  %v2874_v2 = vcombine.high %v2872_v9, %v2872_v9 }
 0x617   :  { %v2951_v0 = vmax.f32 %v2872_v9, 0.0  ;;  %v2891_v7 = vcombine.high %v2883_v59, %v2883_v59  ;;  %v2892_v13 = vcombine.high %v2890_v57, %v2890_v57  ;;  %v2950_v49 = vmax.f32 %v2873_v54, 0.0 }
 0x618   :  { %v3217_v41 = vadd.f32 %v5707_v40, %v5706_v44  ;;  %v2953_v21 = vmax.f32 %v2883_v59, 0.0  ;;  %v2952_v53 = vmax.f32 %v2874_v2, 0.0  ;;  %v2955_v42 = vmax.f32 %v2890_v57, 0.0 }
 0x619   :  { %v3244_v51 = vadd.f32 %v5709_v17, %v2949_v62  ;;  %v3246_v46 = vadd.f32 %v5710_v23, %v2951_v0  ;;  %v2954_v63 = vmax.f32 %v2891_v7, 0.0  ;;  %v2956_v1 = vmax.f32 %v2892_v13, 0.0 }
 0x61a   :  { %v3245_v5 = vadd.f32 %v3213_v26, %v2950_v49  ;;  %v3248_v32 = vadd.f32 %v3216_v6, %v2953_v21  ;;  %v3247_v19 = vadd.f32 %v3215_v38, %v2952_v53  ;;  %v3250_v33 = vadd.f32 %v3218_v15, %v2955_v42 }
 0x61b   :  { %v3249_v11 = vadd.f32 %v3217_v41, %v2954_v63  ;;  %v3251_v58 = vadd.f32 %v3219_v3, %v2956_v1  ;;  %v3479_v18 = vrot.slane %v3244_v51, %v4865_v56  ;;  %v3483_v12 = vrot.slane %v3244_v51, %v5681_v39 }
 0x61c   :  { %v3487_v30 = vrot.slane %v3245_v5, %v4865_v56  ;;  %v3491_v60 = vrot.slane %v3245_v5, %v5681_v39  ;;  %v3495_v50 = vrot.slane %v3246_v46, %v4865_v56  ;;  %v3499_v36 = vrot.slane %v3246_v46, %v5681_v39 }
 0x61d   :  { %v3539_v34 = vrot.slane %v3251_v58, %v5681_v39  ;;  %v3503_v25 = vrot.slane %v3247_v19, %v4865_v56  ;;  %v3507_v48 = vrot.slane %v3247_v19, %v5681_v39  ;;  %v3511_v22 = vrot.slane %v3248_v32, %v4865_v56 }
 0x61e   :  { %v3589_v61 = vsel %vm3540_vm5, %v3487_v30, %v3479_v18  ;;  %v3596_v37 = vsel %vm3540_vm5, %v3491_v60, %v3483_v12  ;;  %v3515_v45 = vrot.slane %v3248_v32, %v5681_v39  ;;  %v3519_v24 = vrot.slane %v3249_v11, %v4865_v56 }
 0x61f   :  { %v3590_v14 = vsel %vm3542_vm6, %v3495_v50, %v3589_v61  ;;  %v3597_v8 = vsel %vm3542_vm6, %v3499_v36, %v3596_v37  ;;  %v3523_v52 = vrot.slane %v3249_v11, %v5681_v39  ;;  %v3527_v26 = vrot.slane %v3250_v33, %v4865_v56 }
 0x620   :  { %v3591_v47 = vsel %vm3544_vm7, %v3503_v25, %v3590_v14  ;;  %v3598_v31 = vsel %vm3544_vm7, %v3507_v48, %v3597_v8  ;;  %v3531_v35 = vrot.slane %v3250_v33, %v5681_v39  ;;  %v3535_v55 = vrot.slane %v3251_v58, %v4865_v56 }
 0x621   :  { %v3592_v43 = vsel %vm3546_vm8, %v3511_v22, %v3591_v47  ;;  %v3599_v10 = vsel %vm3546_vm8, %v3515_v45, %v3598_v31 }
 0x622   :  { %v3593_v27 = vsel %vm3548_vm9, %v3519_v24, %v3592_v43  ;;  %v3600_v4 = vsel %vm3548_vm9, %v3523_v52, %v3599_v10 }
 0x623   :  { %v3594_v38 = vsel %vm3550_vm10, %v3527_v26, %v3593_v27  ;;  %v3601_v28 = vsel %vm3550_vm10, %v3531_v35, %v3600_v4 }
 0x624   :  { %v3595_v29 = vsel %vm3552_vm11, %v3535_v55, %v3594_v38  ;;  %v3602_v6 = vsel %vm3552_vm11, %v3539_v34, %v3601_v28 }
 0x625   :  { %3617 = vst [vmem:[#allocation17 + $0x30] sm:$0xff] %v3595_v29  ;;  %3618 = vst [vmem:[#allocation17 + $0x38] sm:$0xff] %v3602_v6 }
 0x626   :  { %4440 = shalt.err (!%p4437_p7)
}
 0x627   :  { %3630 = dma.vmem_to_hbm [thread:$0]  %s3625_s2, 1024, %s5625_s17, [#allocation4], %s4467_s27, %s4467_s27, %s4468_s0  }
 0x628   :  { %4459 = dma.done.wait [#allocation4], 1024  }
 0x629   :  { %4460 = vsyncadd [#allocation4], 4294966272 }
 0x62a   :  { %3634 = vsyncpa [#allocation3], 1 }
 0x62b   :  { %3635 = vsyncpa [#allocation6], 1 }
 0x62c   :  { %3636 = vsyncpa [#allocation9], 1 }
 0x62d   :  { %3637 = vsyncpa [#allocation12], 1 }
 0x62e   :  { %3638 = vsyncpa [#allocation15], 1 }
 0x62f   :  { %3639 = vsyncpa [#allocation4], 1 }

</bundles_post_ra>
